<compile_context>
chip_gen: v7x
topology: tpu7x:2x2x1
jax: 0.10.0
libtpu: 0.0.40
codegen_flags: <defaults>
</compile_context>

<pallas_src>
import jax
import jax.numpy as jnp
from jax.experimental import pallas as pl
from jax.experimental.pallas import tpu as pltpu

OUT_PAD = 128  # lane-dense padded width of the FC head output


def _lstm_fc_kernel(x_ref, wih_ref, whh_ref, b_ref, h0_ref, c0_ref,
                    wfc_ref, bfc_ref, out_ref):
    # x_ref:   (T*Bp, D)  bf16, time-major, rows [t*Bp:(t+1)*Bp] = time step t
    # wih_ref: (D, 4H)    bf16, transposed weight_ih_l0, gate order [i, f, g, o]
    # whh_ref: (H, 4H)    bf16, transposed weight_hh_l0
    # b_ref:   (1, 4H)    f32, b_ih_l0 + b_hh_l0
    # h0_ref:  (Bp, H)    f32 initial hidden state (layer 0, batch padded to 8n)
    # c0_ref:  (Bp, H)    f32 initial cell state
    # wfc_ref: (H, 128)   f32, transposed fc weight padded to 128 lanes
    # bfc_ref: (1, 128)   f32, fc bias padded to 128 lanes
    # out_ref: (Bp, 128)  f32 lane-dense output; wrapper slices [:B, :2]
    Bp, H = h0_ref.shape
    TB = x_ref.shape[0]
    T = TB // Bp

    # Time-parallel input projection: ONE MXU matmul for all time steps
    # (bf16 operands, f32 accumulation). Kept as a value -> stays in vregs.
    xproj = (
        jnp.dot(x_ref[...], wih_ref[...], preferred_element_type=jnp.float32)
        + b_ref[...]
    )                                                        # (T*Bp, 4H) f32

    whh = whh_ref[...]                                       # bf16, hoisted
    h = h0_ref[...]                                          # f32 carries
    c = c0_ref[...]

    # Recurrence: T is small & static -> fully unrolled; all slice starts are
    # static multiples of Bp (itself a multiple of 8) -> sublane-aligned.
    for t in range(T):
        xg = xproj[t * Bp:(t + 1) * Bp, :]                   # (Bp, 4H)
        gates = xg + jnp.dot(h.astype(jnp.bfloat16), whh,
                             preferred_element_type=jnp.float32)
        # H == 128 -> each gate slice is 128-lane aligned.
        i_g = jax.nn.sigmoid(gates[:, 0 * H:1 * H])
        f_g = jax.nn.sigmoid(gates[:, 1 * H:2 * H])
        g_g = jnp.tanh(gates[:, 2 * H:3 * H])
        o_g = jax.nn.sigmoid(gates[:, 3 * H:4 * H])
        c = f_g * c + i_g * g_g
        h = o_g * jnp.tanh(c)

    # Last-time-step output -> (dropout = identity in eval) -> padded FC head.
    # Tiny (Bp x H)x(H x 128) matmul kept in f32 for parity; output is an
    # unmasked 128-lane store.
    out_ref[...] = (
        jnp.dot(h, wfc_ref[...], preferred_element_type=jnp.float32)
        + bfc_ref[...]
    )


def lstm_model_forward(params, x, hidden):
    """Forward pass of LSTM_Model (eval mode).

    x:      (B, T, D)  batch_first input
    hidden: (h0, c0), each (num_layers=1, B, H)   (as returned by init_hidden)
    returns (B, 2)
    """
    wih, whh, bih, bhh, wfc, bfc = params
    B, T, D = x.shape
    H = whh.shape[1]
    Bp = max(8, ((B + 7) // 8) * 8)          # pad batch rows to 8 sublanes
    pad_b = Bp - B

    # Layout plumbing (cheap, done once in the wrapper):
    x_tm = jnp.transpose(x, (1, 0, 2))                       # (T, B, D)
    x_tm = jnp.pad(x_tm, ((0, 0), (0, pad_b), (0, 0)))       # (T, Bp, D)
    x_tm = x_tm.reshape(T * Bp, D).astype(jnp.bfloat16)      # time-major rows

    wih_t = wih.T.astype(jnp.bfloat16)                       # (D, 4H)
    whh_t = whh.T.astype(jnp.bfloat16)                       # (H, 4H)
    b = (bih + bhh).reshape(1, 4 * H).astype(jnp.float32)

    wfc_t = jnp.zeros((H, OUT_PAD), jnp.float32).at[:, :2].set(wfc.T)
    bfc_p = jnp.zeros((1, OUT_PAD), jnp.float32).at[0, :2].set(bfc)

    h0 = jnp.pad(hidden[0][0], ((0, pad_b), (0, 0))).astype(jnp.float32)
    c0 = jnp.pad(hidden[1][0], ((0, pad_b), (0, 0))).astype(jnp.float32)

    flops = (2 * T * Bp * D * 4 * H          # input projection
             + 2 * T * Bp * H * 4 * H        # recurrence matmuls
             + 2 * Bp * H * OUT_PAD)         # FC head
    transcendentals = T * Bp * (4 * H + H)   # sigmoid/tanh per step
    bytes_accessed = (x_tm.size * 2 + wih_t.size * 2 + whh_t.size * 2
                      + b.size * 4 + h0.size * 4 + c0.size * 4
                      + wfc_t.size * 4 + bfc_p.size * 4 + Bp * OUT_PAD * 4)

    vspec = pl.BlockSpec(memory_space=pltpu.MemorySpace.VMEM)
    out_full = pl.pallas_call(
        _lstm_fc_kernel,
        out_shape=jax.ShapeDtypeStruct((Bp, OUT_PAD), jnp.float32),
        in_specs=[vspec] * 8,
        out_specs=vspec,
        cost_estimate=pl.CostEstimate(flops=flops,
                                      transcendentals=transcendentals,
                                      bytes_accessed=bytes_accessed),
        compiler_params=pltpu.CompilerParams(vmem_limit_bytes=32 * 1024 * 1024),
    )(x_tm, wih_t, whh_t, b, h0, c0, wfc_t, bfc_p)

    return out_full[:B, :2]


def init_params(key, input_size, hidden_size=128):
    """Deterministic synthetic parameters in the PyTorch layouts."""
    H = hidden_size
    k1, k2, k3, k4, k5, k6 = jax.random.split(key, 6)
    s = 1.0 / float(jnp.sqrt(jnp.float32(H)))
    wih = jax.random.uniform(k1, (4 * H, input_size), jnp.float32, -s, s)  # weight_ih_l0
    whh = jax.random.uniform(k2, (4 * H, H), jnp.float32, -s, s)           # weight_hh_l0
    bih = jax.random.uniform(k3, (4 * H,), jnp.float32, -s, s)             # bias_ih_l0
    bhh = jax.random.uniform(k4, (4 * H,), jnp.float32, -s, s)             # bias_hh_l0
    wfc = jax.random.uniform(k5, (2, H), jnp.float32, -s, s)               # fc.weight
    bfc = jax.random.uniform(k6, (2,), jnp.float32, -s, s)                 # fc.bias
    return wih, whh, bih, bhh, wfc, bfc


def init_hidden(batch_size, hidden_size=128, num_layers=1):
    """Mirror of LSTM_Model.init_hidden: zero (h0, c0)."""
    h0 = jnp.zeros((num_layers, batch_size, hidden_size), jnp.float32)
    c0 = jnp.zeros((num_layers, batch_size, hidden_size), jnp.float32)
    return h0, c0


if __name__ == "__main__":
    key = jax.random.PRNGKey(0)
    kx, kp = jax.random.split(key)

    B, T, D, H = 2, 8, 16, 128          # batch=2, seq=8, input_size=16, hidden=128
    x = jax.random.normal(kx, (B, T, D), jnp.float32)
    params = init_params(kp, input_size=D, hidden_size=H)
    hidden = init_hidden(B, H)

    out = jax.jit(lstm_model_forward)(params, x, hidden)
    jax.block_until_ready(out)

    assert out.shape == (B, 2), out.shape
    assert bool(jnp.all(jnp.isfinite(out)))
    print("KERNEL_OK")
</pallas_src>

<mosaic_0001>
module attributes {stable_mosaic.version = 11 : i64} {
  func.func @_lstm_fc_kernel(%arg0: memref<64x16xbf16, #tpu.memory_space<vmem>>, %arg1: memref<16x512xbf16, #tpu.memory_space<vmem>>, %arg2: memref<128x512xbf16, #tpu.memory_space<vmem>>, %arg3: memref<1x512xf32, #tpu.memory_space<vmem>>, %arg4: memref<8x128xf32, #tpu.memory_space<vmem>>, %arg5: memref<8x128xf32, #tpu.memory_space<vmem>>, %arg6: memref<128x128xf32, #tpu.memory_space<vmem>>, %arg7: memref<1x128xf32, #tpu.memory_space<vmem>>, %arg8: memref<8x128xf32, #tpu.memory_space<vmem>>) attributes {dimension_semantics = [], scalar_prefetch = 0 : i64, scratch_operands = 0 : i64, tpu.core_type = #tpu.core_type<tc>} {
    %c0 = arith.constant 0 : index
    %c0_0 = arith.constant 0 : index
    %0 = vector.load %arg0[%c0, %c0_0] : memref<64x16xbf16, #tpu.memory_space<vmem>>, vector<64x16xbf16>
    %c0_1 = arith.constant 0 : index
    %c0_2 = arith.constant 0 : index
    %1 = vector.load %arg1[%c0_1, %c0_2] : memref<16x512xbf16, #tpu.memory_space<vmem>>, vector<16x512xbf16>
    %cst = arith.constant dense<0.000000e+00> : vector<64x512xf32>
    %2 = tpu.matmul %0, %1, %cst {dimension_numbers = #tpu.dot_dimension_numbers<[1], [0], [0], [1], [0, 0, 1, 1], [], []>} : vector<64x16xbf16>, vector<16x512xbf16>, vector<64x512xf32> -> vector<64x512xf32>
    %c0_3 = arith.constant 0 : index
    %c0_4 = arith.constant 0 : index
    %3 = vector.load %arg3[%c0_3, %c0_4] : memref<1x512xf32, #tpu.memory_space<vmem>>, vector<1x512xf32>
    %4 = vector.broadcast %3 : vector<1x512xf32> to vector<64x512xf32>
    %5 = arith.addf %2, %4 : vector<64x512xf32>
    %c0_5 = arith.constant 0 : index
    %c0_6 = arith.constant 0 : index
    %6 = vector.load %arg2[%c0_5, %c0_6] : memref<128x512xbf16, #tpu.memory_space<vmem>>, vector<128x512xbf16>
    %c0_7 = arith.constant 0 : index
    %c0_8 = arith.constant 0 : index
    %7 = vector.load %arg4[%c0_7, %c0_8] : memref<8x128xf32, #tpu.memory_space<vmem>>, vector<8x128xf32>
    %c0_9 = arith.constant 0 : index
    %c0_10 = arith.constant 0 : index
    %8 = vector.load %arg5[%c0_9, %c0_10] : memref<8x128xf32, #tpu.memory_space<vmem>>, vector<8x128xf32>
    %9 = vector.extract_strided_slice %5 {offsets = [0, 0], sizes = [8, 512], strides = [1, 1]} : vector<64x512xf32> to vector<8x512xf32>
    %10 = arith.truncf %7 : vector<8x128xf32> to vector<8x128xbf16>
    %cst_11 = arith.constant dense<0.000000e+00> : vector<8x512xf32>
    %11 = tpu.matmul %10, %6, %cst_11 {dimension_numbers = #tpu.dot_dimension_numbers<[1], [0], [0], [1], [0, 0, 1, 1], [], []>} : vector<8x128xbf16>, vector<128x512xbf16>, vector<8x512xf32> -> vector<8x512xf32>
    %12 = arith.addf %9, %11 : vector<8x512xf32>
    %13 = vector.extract_strided_slice %12 {offsets = [0, 0], sizes = [8, 128], strides = [1, 1]} : vector<8x512xf32> to vector<8x128xf32>
    %14 = arith.negf %13 : vector<8x128xf32>
    %15 = math.exp %14 : vector<8x128xf32>
    %cst_12 = arith.constant 1.000000e+00 : f32
    %16 = vector.broadcast %cst_12 : f32 to vector<8x128xf32>
    %17 = arith.addf %16, %15 : vector<8x128xf32>
    %18 = arith.divf %16, %17 : vector<8x128xf32>
    %19 = vector.extract_strided_slice %12 {offsets = [0, 128], sizes = [8, 128], strides = [1, 1]} : vector<8x512xf32> to vector<8x128xf32>
    %20 = arith.negf %19 : vector<8x128xf32>
    %21 = math.exp %20 : vector<8x128xf32>
    %cst_13 = arith.constant 1.000000e+00 : f32
    %22 = vector.broadcast %cst_13 : f32 to vector<8x128xf32>
    %23 = arith.addf %22, %21 : vector<8x128xf32>
    %24 = arith.divf %22, %23 : vector<8x128xf32>
    %25 = vector.extract_strided_slice %12 {offsets = [0, 256], sizes = [8, 128], strides = [1, 1]} : vector<8x512xf32> to vector<8x128xf32>
    %26 = math.tanh %25 : vector<8x128xf32>
    %27 = vector.extract_strided_slice %12 {offsets = [0, 384], sizes = [8, 128], strides = [1, 1]} : vector<8x512xf32> to vector<8x128xf32>
    %28 = arith.negf %27 : vector<8x128xf32>
    %29 = math.exp %28 : vector<8x128xf32>
    %cst_14 = arith.constant 1.000000e+00 : f32
    %30 = vector.broadcast %cst_14 : f32 to vector<8x128xf32>
    %31 = arith.addf %30, %29 : vector<8x128xf32>
    %32 = arith.divf %30, %31 : vector<8x128xf32>
    %33 = arith.mulf %24, %8 : vector<8x128xf32>
    %34 = arith.mulf %18, %26 : vector<8x128xf32>
    %35 = arith.addf %33, %34 : vector<8x128xf32>
    %36 = math.tanh %35 : vector<8x128xf32>
    %37 = arith.mulf %32, %36 : vector<8x128xf32>
    %38 = vector.extract_strided_slice %5 {offsets = [8, 0], sizes = [8, 512], strides = [1, 1]} : vector<64x512xf32> to vector<8x512xf32>
    %39 = arith.truncf %37 : vector<8x128xf32> to vector<8x128xbf16>
    %cst_15 = arith.constant dense<0.000000e+00> : vector<8x512xf32>
    %40 = tpu.matmul %39, %6, %cst_15 {dimension_numbers = #tpu.dot_dimension_numbers<[1], [0], [0], [1], [0, 0, 1, 1], [], []>} : vector<8x128xbf16>, vector<128x512xbf16>, vector<8x512xf32> -> vector<8x512xf32>
    %41 = arith.addf %38, %40 : vector<8x512xf32>
    %42 = vector.extract_strided_slice %41 {offsets = [0, 0], sizes = [8, 128], strides = [1, 1]} : vector<8x512xf32> to vector<8x128xf32>
    %43 = arith.negf %42 : vector<8x128xf32>
    %44 = math.exp %43 : vector<8x128xf32>
    %cst_16 = arith.constant 1.000000e+00 : f32
    %45 = vector.broadcast %cst_16 : f32 to vector<8x128xf32>
    %46 = arith.addf %45, %44 : vector<8x128xf32>
    %47 = arith.divf %45, %46 : vector<8x128xf32>
    %48 = vector.extract_strided_slice %41 {offsets = [0, 128], sizes = [8, 128], strides = [1, 1]} : vector<8x512xf32> to vector<8x128xf32>
    %49 = arith.negf %48 : vector<8x128xf32>
    %50 = math.exp %49 : vector<8x128xf32>
    %cst_17 = arith.constant 1.000000e+00 : f32
    %51 = vector.broadcast %cst_17 : f32 to vector<8x128xf32>
    %52 = arith.addf %51, %50 : vector<8x128xf32>
    %53 = arith.divf %51, %52 : vector<8x128xf32>
    %54 = vector.extract_strided_slice %41 {offsets = [0, 256], sizes = [8, 128], strides = [1, 1]} : vector<8x512xf32> to vector<8x128xf32>
    %55 = math.tanh %54 : vector<8x128xf32>
    %56 = vector.extract_strided_slice %41 {offsets = [0, 384], sizes = [8, 128], strides = [1, 1]} : vector<8x512xf32> to vector<8x128xf32>
    %57 = arith.negf %56 : vector<8x128xf32>
    %58 = math.exp %57 : vector<8x128xf32>
    %cst_18 = arith.constant 1.000000e+00 : f32
    %59 = vector.broadcast %cst_18 : f32 to vector<8x128xf32>
    %60 = arith.addf %59, %58 : vector<8x128xf32>
    %61 = arith.divf %59, %60 : vector<8x128xf32>
    %62 = arith.mulf %53, %35 : vector<8x128xf32>
    %63 = arith.mulf %47, %55 : vector<8x128xf32>
    %64 = arith.addf %62, %63 : vector<8x128xf32>
    %65 = math.tanh %64 : vector<8x128xf32>
    %66 = arith.mulf %61, %65 : vector<8x128xf32>
    %67 = vector.extract_strided_slice %5 {offsets = [16, 0], sizes = [8, 512], strides = [1, 1]} : vector<64x512xf32> to vector<8x512xf32>
    %68 = arith.truncf %66 : vector<8x128xf32> to vector<8x128xbf16>
    %cst_19 = arith.constant dense<0.000000e+00> : vector<8x512xf32>
    %69 = tpu.matmul %68, %6, %cst_19 {dimension_numbers = #tpu.dot_dimension_numbers<[1], [0], [0], [1], [0, 0, 1, 1], [], []>} : vector<8x128xbf16>, vector<128x512xbf16>, vector<8x512xf32> -> vector<8x512xf32>
    %70 = arith.addf %67, %69 : vector<8x512xf32>
    %71 = vector.extract_strided_slice %70 {offsets = [0, 0], sizes = [8, 128], strides = [1, 1]} : vector<8x512xf32> to vector<8x128xf32>
    %72 = arith.negf %71 : vector<8x128xf32>
    %73 = math.exp %72 : vector<8x128xf32>
    %cst_20 = arith.constant 1.000000e+00 : f32
    %74 = vector.broadcast %cst_20 : f32 to vector<8x128xf32>
    %75 = arith.addf %74, %73 : vector<8x128xf32>
    %76 = arith.divf %74, %75 : vector<8x128xf32>
    %77 = vector.extract_strided_slice %70 {offsets = [0, 128], sizes = [8, 128], strides = [1, 1]} : vector<8x512xf32> to vector<8x128xf32>
    %78 = arith.negf %77 : vector<8x128xf32>
    %79 = math.exp %78 : vector<8x128xf32>
    %cst_21 = arith.constant 1.000000e+00 : f32
    %80 = vector.broadcast %cst_21 : f32 to vector<8x128xf32>
    %81 = arith.addf %80, %79 : vector<8x128xf32>
    %82 = arith.divf %80, %81 : vector<8x128xf32>
    %83 = vector.extract_strided_slice %70 {offsets = [0, 256], sizes = [8, 128], strides = [1, 1]} : vector<8x512xf32> to vector<8x128xf32>
    %84 = math.tanh %83 : vector<8x128xf32>
    %85 = vector.extract_strided_slice %70 {offsets = [0, 384], sizes = [8, 128], strides = [1, 1]} : vector<8x512xf32> to vector<8x128xf32>
    %86 = arith.negf %85 : vector<8x128xf32>
    %87 = math.exp %86 : vector<8x128xf32>
    %cst_22 = arith.constant 1.000000e+00 : f32
    %88 = vector.broadcast %cst_22 : f32 to vector<8x128xf32>
    %89 = arith.addf %88, %87 : vector<8x128xf32>
    %90 = arith.divf %88, %89 : vector<8x128xf32>
    %91 = arith.mulf %82, %64 : vector<8x128xf32>
    %92 = arith.mulf %76, %84 : vector<8x128xf32>
    %93 = arith.addf %91, %92 : vector<8x128xf32>
    %94 = math.tanh %93 : vector<8x128xf32>
    %95 = arith.mulf %90, %94 : vector<8x128xf32>
    %96 = vector.extract_strided_slice %5 {offsets = [24, 0], sizes = [8, 512], strides = [1, 1]} : vector<64x512xf32> to vector<8x512xf32>
    %97 = arith.truncf %95 : vector<8x128xf32> to vector<8x128xbf16>
    %cst_23 = arith.constant dense<0.000000e+00> : vector<8x512xf32>
    %98 = tpu.matmul %97, %6, %cst_23 {dimension_numbers = #tpu.dot_dimension_numbers<[1], [0], [0], [1], [0, 0, 1, 1], [], []>} : vector<8x128xbf16>, vector<128x512xbf16>, vector<8x512xf32> -> vector<8x512xf32>
    %99 = arith.addf %96, %98 : vector<8x512xf32>
    %100 = vector.extract_strided_slice %99 {offsets = [0, 0], sizes = [8, 128], strides = [1, 1]} : vector<8x512xf32> to vector<8x128xf32>
    %101 = arith.negf %100 : vector<8x128xf32>
    %102 = math.exp %101 : vector<8x128xf32>
    %cst_24 = arith.constant 1.000000e+00 : f32
    %103 = vector.broadcast %cst_24 : f32 to vector<8x128xf32>
    %104 = arith.addf %103, %102 : vector<8x128xf32>
    %105 = arith.divf %103, %104 : vector<8x128xf32>
    %106 = vector.extract_strided_slice %99 {offsets = [0, 128], sizes = [8, 128], strides = [1, 1]} : vector<8x512xf32> to vector<8x128xf32>
    %107 = arith.negf %106 : vector<8x128xf32>
    %108 = math.exp %107 : vector<8x128xf32>
    %cst_25 = arith.constant 1.000000e+00 : f32
    %109 = vector.broadcast %cst_25 : f32 to vector<8x128xf32>
    %110 = arith.addf %109, %108 : vector<8x128xf32>
    %111 = arith.divf %109, %110 : vector<8x128xf32>
    %112 = vector.extract_strided_slice %99 {offsets = [0, 256], sizes = [8, 128], strides = [1, 1]} : vector<8x512xf32> to vector<8x128xf32>
    %113 = math.tanh %112 : vector<8x128xf32>
    %114 = vector.extract_strided_slice %99 {offsets = [0, 384], sizes = [8, 128], strides = [1, 1]} : vector<8x512xf32> to vector<8x128xf32>
    %115 = arith.negf %114 : vector<8x128xf32>
    %116 = math.exp %115 : vector<8x128xf32>
    %cst_26 = arith.constant 1.000000e+00 : f32
    %117 = vector.broadcast %cst_26 : f32 to vector<8x128xf32>
    %118 = arith.addf %117, %116 : vector<8x128xf32>
    %119 = arith.divf %117, %118 : vector<8x128xf32>
    %120 = arith.mulf %111, %93 : vector<8x128xf32>
    %121 = arith.mulf %105, %113 : vector<8x128xf32>
    %122 = arith.addf %120, %121 : vector<8x128xf32>
    %123 = math.tanh %122 : vector<8x128xf32>
    %124 = arith.mulf %119, %123 : vector<8x128xf32>
    %125 = vector.extract_strided_slice %5 {offsets = [32, 0], sizes = [8, 512], strides = [1, 1]} : vector<64x512xf32> to vector<8x512xf32>
    %126 = arith.truncf %124 : vector<8x128xf32> to vector<8x128xbf16>
    %cst_27 = arith.constant dense<0.000000e+00> : vector<8x512xf32>
    %127 = tpu.matmul %126, %6, %cst_27 {dimension_numbers = #tpu.dot_dimension_numbers<[1], [0], [0], [1], [0, 0, 1, 1], [], []>} : vector<8x128xbf16>, vector<128x512xbf16>, vector<8x512xf32> -> vector<8x512xf32>
    %128 = arith.addf %125, %127 : vector<8x512xf32>
    %129 = vector.extract_strided_slice %128 {offsets = [0, 0], sizes = [8, 128], strides = [1, 1]} : vector<8x512xf32> to vector<8x128xf32>
    %130 = arith.negf %129 : vector<8x128xf32>
    %131 = math.exp %130 : vector<8x128xf32>
    %cst_28 = arith.constant 1.000000e+00 : f32
    %132 = vector.broadcast %cst_28 : f32 to vector<8x128xf32>
    %133 = arith.addf %132, %131 : vector<8x128xf32>
    %134 = arith.divf %132, %133 : vector<8x128xf32>
    %135 = vector.extract_strided_slice %128 {offsets = [0, 128], sizes = [8, 128], strides = [1, 1]} : vector<8x512xf32> to vector<8x128xf32>
    %136 = arith.negf %135 : vector<8x128xf32>
    %137 = math.exp %136 : vector<8x128xf32>
    %cst_29 = arith.constant 1.000000e+00 : f32
    %138 = vector.broadcast %cst_29 : f32 to vector<8x128xf32>
    %139 = arith.addf %138, %137 : vector<8x128xf32>
    %140 = arith.divf %138, %139 : vector<8x128xf32>
    %141 = vector.extract_strided_slice %128 {offsets = [0, 256], sizes = [8, 128], strides = [1, 1]} : vector<8x512xf32> to vector<8x128xf32>
    %142 = math.tanh %141 : vector<8x128xf32>
    %143 = vector.extract_strided_slice %128 {offsets = [0, 384], sizes = [8, 128], strides = [1, 1]} : vector<8x512xf32> to vector<8x128xf32>
    %144 = arith.negf %143 : vector<8x128xf32>
    %145 = math.exp %144 : vector<8x128xf32>
    %cst_30 = arith.constant 1.000000e+00 : f32
    %146 = vector.broadcast %cst_30 : f32 to vector<8x128xf32>
    %147 = arith.addf %146, %145 : vector<8x128xf32>
    %148 = arith.divf %146, %147 : vector<8x128xf32>
    %149 = arith.mulf %140, %122 : vector<8x128xf32>
    %150 = arith.mulf %134, %142 : vector<8x128xf32>
    %151 = arith.addf %149, %150 : vector<8x128xf32>
    %152 = math.tanh %151 : vector<8x128xf32>
    %153 = arith.mulf %148, %152 : vector<8x128xf32>
    %154 = vector.extract_strided_slice %5 {offsets = [40, 0], sizes = [8, 512], strides = [1, 1]} : vector<64x512xf32> to vector<8x512xf32>
    %155 = arith.truncf %153 : vector<8x128xf32> to vector<8x128xbf16>
    %cst_31 = arith.constant dense<0.000000e+00> : vector<8x512xf32>
    %156 = tpu.matmul %155, %6, %cst_31 {dimension_numbers = #tpu.dot_dimension_numbers<[1], [0], [0], [1], [0, 0, 1, 1], [], []>} : vector<8x128xbf16>, vector<128x512xbf16>, vector<8x512xf32> -> vector<8x512xf32>
    %157 = arith.addf %154, %156 : vector<8x512xf32>
    %158 = vector.extract_strided_slice %157 {offsets = [0, 0], sizes = [8, 128], strides = [1, 1]} : vector<8x512xf32> to vector<8x128xf32>
    %159 = arith.negf %158 : vector<8x128xf32>
    %160 = math.exp %159 : vector<8x128xf32>
    %cst_32 = arith.constant 1.000000e+00 : f32
    %161 = vector.broadcast %cst_32 : f32 to vector<8x128xf32>
    %162 = arith.addf %161, %160 : vector<8x128xf32>
    %163 = arith.divf %161, %162 : vector<8x128xf32>
    %164 = vector.extract_strided_slice %157 {offsets = [0, 128], sizes = [8, 128], strides = [1, 1]} : vector<8x512xf32> to vector<8x128xf32>
    %165 = arith.negf %164 : vector<8x128xf32>
    %166 = math.exp %165 : vector<8x128xf32>
    %cst_33 = arith.constant 1.000000e+00 : f32
    %167 = vector.broadcast %cst_33 : f32 to vector<8x128xf32>
    %168 = arith.addf %167, %166 : vector<8x128xf32>
    %169 = arith.divf %167, %168 : vector<8x128xf32>
    %170 = vector.extract_strided_slice %157 {offsets = [0, 256], sizes = [8, 128], strides = [1, 1]} : vector<8x512xf32> to vector<8x128xf32>
    %171 = math.tanh %170 : vector<8x128xf32>
    %172 = vector.extract_strided_slice %157 {offsets = [0, 384], sizes = [8, 128], strides = [1, 1]} : vector<8x512xf32> to vector<8x128xf32>
    %173 = arith.negf %172 : vector<8x128xf32>
    %174 = math.exp %173 : vector<8x128xf32>
    %cst_34 = arith.constant 1.000000e+00 : f32
    %175 = vector.broadcast %cst_34 : f32 to vector<8x128xf32>
    %176 = arith.addf %175, %174 : vector<8x128xf32>
    %177 = arith.divf %175, %176 : vector<8x128xf32>
    %178 = arith.mulf %169, %151 : vector<8x128xf32>
    %179 = arith.mulf %163, %171 : vector<8x128xf32>
    %180 = arith.addf %178, %179 : vector<8x128xf32>
    %181 = math.tanh %180 : vector<8x128xf32>
    %182 = arith.mulf %177, %181 : vector<8x128xf32>
    %183 = vector.extract_strided_slice %5 {offsets = [48, 0], sizes = [8, 512], strides = [1, 1]} : vector<64x512xf32> to vector<8x512xf32>
    %184 = arith.truncf %182 : vector<8x128xf32> to vector<8x128xbf16>
    %cst_35 = arith.constant dense<0.000000e+00> : vector<8x512xf32>
    %185 = tpu.matmul %184, %6, %cst_35 {dimension_numbers = #tpu.dot_dimension_numbers<[1], [0], [0], [1], [0, 0, 1, 1], [], []>} : vector<8x128xbf16>, vector<128x512xbf16>, vector<8x512xf32> -> vector<8x512xf32>
    %186 = arith.addf %183, %185 : vector<8x512xf32>
    %187 = vector.extract_strided_slice %186 {offsets = [0, 0], sizes = [8, 128], strides = [1, 1]} : vector<8x512xf32> to vector<8x128xf32>
    %188 = arith.negf %187 : vector<8x128xf32>
    %189 = math.exp %188 : vector<8x128xf32>
    %cst_36 = arith.constant 1.000000e+00 : f32
    %190 = vector.broadcast %cst_36 : f32 to vector<8x128xf32>
    %191 = arith.addf %190, %189 : vector<8x128xf32>
    %192 = arith.divf %190, %191 : vector<8x128xf32>
    %193 = vector.extract_strided_slice %186 {offsets = [0, 128], sizes = [8, 128], strides = [1, 1]} : vector<8x512xf32> to vector<8x128xf32>
    %194 = arith.negf %193 : vector<8x128xf32>
    %195 = math.exp %194 : vector<8x128xf32>
    %cst_37 = arith.constant 1.000000e+00 : f32
    %196 = vector.broadcast %cst_37 : f32 to vector<8x128xf32>
    %197 = arith.addf %196, %195 : vector<8x128xf32>
    %198 = arith.divf %196, %197 : vector<8x128xf32>
    %199 = vector.extract_strided_slice %186 {offsets = [0, 256], sizes = [8, 128], strides = [1, 1]} : vector<8x512xf32> to vector<8x128xf32>
    %200 = math.tanh %199 : vector<8x128xf32>
    %201 = vector.extract_strided_slice %186 {offsets = [0, 384], sizes = [8, 128], strides = [1, 1]} : vector<8x512xf32> to vector<8x128xf32>
    %202 = arith.negf %201 : vector<8x128xf32>
    %203 = math.exp %202 : vector<8x128xf32>
    %cst_38 = arith.constant 1.000000e+00 : f32
    %204 = vector.broadcast %cst_38 : f32 to vector<8x128xf32>
    %205 = arith.addf %204, %203 : vector<8x128xf32>
    %206 = arith.divf %204, %205 : vector<8x128xf32>
    %207 = arith.mulf %198, %180 : vector<8x128xf32>
    %208 = arith.mulf %192, %200 : vector<8x128xf32>
    %209 = arith.addf %207, %208 : vector<8x128xf32>
    %210 = math.tanh %209 : vector<8x128xf32>
    %211 = arith.mulf %206, %210 : vector<8x128xf32>
    %212 = vector.extract_strided_slice %5 {offsets = [56, 0], sizes = [8, 512], strides = [1, 1]} : vector<64x512xf32> to vector<8x512xf32>
    %213 = arith.truncf %211 : vector<8x128xf32> to vector<8x128xbf16>
    %cst_39 = arith.constant dense<0.000000e+00> : vector<8x512xf32>
    %214 = tpu.matmul %213, %6, %cst_39 {dimension_numbers = #tpu.dot_dimension_numbers<[1], [0], [0], [1], [0, 0, 1, 1], [], []>} : vector<8x128xbf16>, vector<128x512xbf16>, vector<8x512xf32> -> vector<8x512xf32>
    %215 = arith.addf %212, %214 : vector<8x512xf32>
    %216 = vector.extract_strided_slice %215 {offsets = [0, 0], sizes = [8, 128], strides = [1, 1]} : vector<8x512xf32> to vector<8x128xf32>
    %217 = arith.negf %216 : vector<8x128xf32>
    %218 = math.exp %217 : vector<8x128xf32>
    %cst_40 = arith.constant 1.000000e+00 : f32
    %219 = vector.broadcast %cst_40 : f32 to vector<8x128xf32>
    %220 = arith.addf %219, %218 : vector<8x128xf32>
    %221 = arith.divf %219, %220 : vector<8x128xf32>
    %222 = vector.extract_strided_slice %215 {offsets = [0, 128], sizes = [8, 128], strides = [1, 1]} : vector<8x512xf32> to vector<8x128xf32>
    %223 = arith.negf %222 : vector<8x128xf32>
    %224 = math.exp %223 : vector<8x128xf32>
    %cst_41 = arith.constant 1.000000e+00 : f32
    %225 = vector.broadcast %cst_41 : f32 to vector<8x128xf32>
    %226 = arith.addf %225, %224 : vector<8x128xf32>
    %227 = arith.divf %225, %226 : vector<8x128xf32>
    %228 = vector.extract_strided_slice %215 {offsets = [0, 256], sizes = [8, 128], strides = [1, 1]} : vector<8x512xf32> to vector<8x128xf32>
    %229 = math.tanh %228 : vector<8x128xf32>
    %230 = vector.extract_strided_slice %215 {offsets = [0, 384], sizes = [8, 128], strides = [1, 1]} : vector<8x512xf32> to vector<8x128xf32>
    %231 = arith.negf %230 : vector<8x128xf32>
    %232 = math.exp %231 : vector<8x128xf32>
    %cst_42 = arith.constant 1.000000e+00 : f32
    %233 = vector.broadcast %cst_42 : f32 to vector<8x128xf32>
    %234 = arith.addf %233, %232 : vector<8x128xf32>
    %235 = arith.divf %233, %234 : vector<8x128xf32>
    %236 = arith.mulf %227, %209 : vector<8x128xf32>
    %237 = arith.mulf %221, %229 : vector<8x128xf32>
    %238 = arith.addf %236, %237 : vector<8x128xf32>
    %239 = math.tanh %238 : vector<8x128xf32>
    %240 = arith.mulf %235, %239 : vector<8x128xf32>
    %c0_43 = arith.constant 0 : index
    %c0_44 = arith.constant 0 : index
    %241 = vector.load %arg6[%c0_43, %c0_44] : memref<128x128xf32, #tpu.memory_space<vmem>>, vector<128x128xf32>
    %cst_45 = arith.constant dense<0.000000e+00> : vector<8x128xf32>
    %242 = tpu.matmul %240, %241, %cst_45 {dimension_numbers = #tpu.dot_dimension_numbers<[1], [0], [0], [1], [0, 0, 1, 1], [], []>} : vector<8x128xf32>, vector<128x128xf32>, vector<8x128xf32> -> vector<8x128xf32>
    %c0_46 = arith.constant 0 : index
    %c0_47 = arith.constant 0 : index
    %243 = vector.load %arg7[%c0_46, %c0_47] : memref<1x128xf32, #tpu.memory_space<vmem>>, vector<1x128xf32>
    %244 = vector.broadcast %243 : vector<1x128xf32> to vector<8x128xf32>
    %245 = arith.addf %242, %244 : vector<8x128xf32>
    %c0_48 = arith.constant 0 : index
    %c0_49 = arith.constant 0 : index
    %246 = vector.load %arg8[%c0_48, %c0_49] : memref<8x128xf32, #tpu.memory_space<vmem>>, vector<8x128xf32>
    tpu.vector_store %arg8[%c0_48, %c0_49], %245 {strides = array<i32>} : memref<8x128xf32, #tpu.memory_space<vmem>>, vector<8x128xf32>,
    return
  }
}

</mosaic_0001>

<bundles_post_ra>
// kernel: lstm_model_forward.1
= control target key start
LH: loop header
LB: loop body
LE: loop exit
PB: predicated region body
PF: predicated region fallthrough
CT: control target
= control target key end

     0   :  { %v2684_v1 = vmov 0   ;;  %vm104_vm0 = vcmask 130048   ;;  %v44_v43 = vlaneseq  ;;  %vm1816_vm1 = vmmov 0   ;;  %s2675_s1 = inlined_call_operand.vmem [shape: bf16[16,512], index: 1, kind: input, shape index: {}]   ;;  %s2676_s0 = inlined_call_operand.vmem [shape: bf16[64,16], index: 0, kind: input, shape index: {}]   ;;  %s2677_s2 = inlined_call_operand.vmem [shape: bf16[128,512], index: 2, kind: input, shape index: {}]   ;;  %s2678_s4 = inlined_call_operand.vmem [shape: f32[8,128], index: 4, kind: input, shape index: {}]   ;;  %s2679_s3 = inlined_call_operand.vmem [shape: f32[1,512], index: 3, kind: input, shape index: {}]   ;;  %s2680_s5 = inlined_call_operand.vmem [shape: f32[8,128], index: 5, kind: input, shape index: {}]   ;;  %s2681_s6 = inlined_call_operand.vmem [shape: f32[128,128], index: 6, kind: input, shape index: {}]   ;;  %s2682_s7 = inlined_call_operand.vmem [shape: f32[1,128], index: 7, kind: input, shape index: {}]   ;;  %s2683_s8 = inlined_call_operand.vmem [shape: f32[8,128], index: 8, kind: output, shape index: {}]  }
   0x1   :  { %v1596_v0 = vld [vmem:[%s2675_s1 + $0x4] ss:$16 sps:$4 sm:$0xff]   ;;  %149 = vmatprep.mubr.bf16.mxu0 %v2684_v1  ;;  %222 = vmatprep.mubr.bf16.mxu1 %v2684_v1  ;;  %v1598_v2 = vld [vmem:[%s2675_s1 + $0xc] ss:$16 sps:$4 sm:$0xff]   ;;  %v1600_v3 = vld [vmem:[%s2675_s1] ss:$16 sps:$4 sm:$0xff]  }
   0x2   :  { %117 = vmatprep.subr.bf16.mxu0 %v1596_v0  ;;  %v1601_v4 = vld [vmem:[%s2675_s1 + $0x8] ss:$16 sps:$4 sm:$0xff]   ;;  %190 = vmatprep.subr.bf16.mxu1 %v1598_v2  ;;  %v1602_v5 = vld [vmem:[%s2676_s0] sm:$0xff]   ;;  %v1888_v7 = vld [vmem:[%s2677_s2 + $0xc] ss:$16 sps:$4 sm:$0xff]   ;;  %v45_v44 = vshrl.u32 %v44_v43, 7 }
   0x3   :  { %118 = vmatpush1.bf16.msra.mxu0 %v1600_v3  ;;  %191 = vmatpush1.bf16.msra.mxu1 %v1601_v4  ;;  %v1883_v6 = vld [vmem:[%s2677_s2 + $0x4] ss:$16 sps:$4 sm:$0xff]   ;;  %v1893_v8 = vld [vmem:[%s2677_s2] ss:$16 sps:$4 sm:$0xff]   ;;  %v1899_v9 = vld [vmem:[%s2677_s2 + $0x8] ss:$16 sps:$4 sm:$0xff]  }
   0x4   :  { %458 = vmatprep.subr.bf16.mxu0 %v1883_v6  ;;  %v1906_v10 = vld [vmem:[%s2677_s2 + $0x24] ss:$16 sps:$4 sm:$0xff]   ;;  %499 = vmatprep.subr.bf16.mxu1 %v1888_v7  ;;  %v1913_v11 = vld [vmem:[%s2677_s2 + $0x2c] ss:$16 sps:$4 sm:$0xff]   ;;  %v1918_v12 = vld [vmem:[%s2677_s2 + $0x20] ss:$16 sps:$4 sm:$0xff]  }
   0x5   :  { %v1923_v13 = vld [vmem:[%s2677_s2 + $0x28] ss:$16 sps:$4 sm:$0xff]   ;;  %v1935_v15 = vld [vmem:[%s2677_s2 + $0x44] ss:$16 sps:$4 sm:$0xff]   ;;  %v1941_v16 = vld [vmem:[%s2677_s2 + $0x4c] ss:$16 sps:$4 sm:$0xff]  }
   0x6   :  { %1451 = vmatmul.mubr.msk.bf16.vlgmr.msra.gmra.mrb[0].mxu0 %vm104_vm0, %v1602_v5  ;;  %1455 = vmatmul.mubr.msk.bf16.vlgmr.msra.gmra.mrb[0].mxu1 %vm104_vm0, %v1602_v5  ;;  %v1615_v14 = vld [vmem:[%s2676_s0 + $0x8] sm:$0xff]   ;;  %v1947_v17 = vld [vmem:[%s2677_s2 + $0x40] ss:$16 sps:$4 sm:$0xff]   ;;  %v1959_v19 = vld [vmem:[%s2677_s2 + $0x64] ss:$16 sps:$4 sm:$0xff]   ;;  %v54_v45 = vsub.s32 2, %v45_v44 }
   0x7   :  { %459 = vmatpush1.bf16.msra.mxu0 %v1893_v8  ;;  %500 = vmatpush1.bf16.msra.mxu1 %v1899_v9  ;;  %v1952_v18 = vld [vmem:[%s2677_s2 + $0x48] ss:$16 sps:$4 sm:$0xff]   ;;  %v1965_v20 = vld [vmem:[%s2677_s2 + $0x6c] ss:$16 sps:$4 sm:$0xff]   ;;  %v1972_v21 = vld [vmem:[%s2677_s2 + $0x60] ss:$16 sps:$4 sm:$0xff]  }
   0x8   :  { %460 = vmatprep.subr.bf16.mxu0 %v1906_v10  ;;  %501 = vmatprep.subr.bf16.mxu1 %v1913_v11  ;;  %v1978_v22 = vld [vmem:[%s2677_s2 + $0x68] ss:$16 sps:$4 sm:$0xff]   ;;  %v1986_v23 = vld [vmem:[%s2677_s2 + $0x84] ss:$16 sps:$4 sm:$0xff]   ;;  %v1993_v24 = vld [vmem:[%s2677_s2 + $0x8c] ss:$16 sps:$4 sm:$0xff]  }
   0x9   :  { %159 = vmatprep.mubr.bf16.mxu0 %v2684_v1  ;;  %232 = vmatprep.mubr.bf16.mxu1 %v2684_v1  ;;  %v1628_v25 = vld [vmem:[%s2676_s0 + $0x10] sm:$0xff]   ;;  %v2009_v27 = vld [vmem:[%s2677_s2 + $0x88] ss:$16 sps:$4 sm:$0xff]   ;;  %v2020_v29 = vld [vmem:[%s2677_s2 + $0xac] ss:$16 sps:$4 sm:$0xff]   ;;  %v58_v46 = vsub.s32 3, %v45_v44 }
   0xa   :  { %v2002_v26 = vld [vmem:[%s2677_s2 + $0x80] ss:$16 sps:$4 sm:$0xff]   ;;  %v2014_v28 = vld [vmem:[%s2677_s2 + $0xa4] ss:$16 sps:$4 sm:$0xff]   ;;  %v2033_v31 = vld [vmem:[%s2677_s2 + $0xa8] ss:$16 sps:$4 sm:$0xff]  }
   0xb   :  { %461 = vmatpush1.bf16.msra.mxu0 %v1918_v12  ;;  %502 = vmatpush1.bf16.msra.mxu1 %v1923_v13  ;;  %v2028_v30 = vld [vmem:[%s2677_s2 + $0xa0] ss:$16 sps:$4 sm:$0xff]   ;;  %v2041_v32 = vld [vmem:[%s2677_s2 + $0xc4] ss:$16 sps:$4 sm:$0xff]   ;;  %v2048_v33 = vld [vmem:[%s2677_s2 + $0xcc] ss:$16 sps:$4 sm:$0xff]  }
   0xc   :  { %462 = vmatprep.subr.bf16.mxu0 %v1935_v15  ;;  %503 = vmatprep.subr.bf16.mxu1 %v1941_v16  ;;  %v1641_v34 = vld [vmem:[%s2676_s0 + $0x18] sm:$0xff]   ;;  %v2057_v35 = vld [vmem:[%s2677_s2 + $0xc0] ss:$16 sps:$4 sm:$0xff]   ;;  %v2069_v37 = vld [vmem:[%s2677_s2 + $0xe4] ss:$16 sps:$4 sm:$0xff]   ;;  %v46_v47 = vsub.s32 0, %v45_v44 }
   0xd   :  { %v2064_v36 = vld [vmem:[%s2677_s2 + $0xc8] ss:$16 sps:$4 sm:$0xff]   ;;  %v2075_v38 = vld [vmem:[%s2677_s2 + $0xec] ss:$16 sps:$4 sm:$0xff]   ;;  %v2083_v39 = vld [vmem:[%s2677_s2 + $0xe0] ss:$16 sps:$4 sm:$0xff]  }
   0xe   :  { %1452 = vmatmul.mubr.msk.bf16.gmra.mrb[4].mxu0 %vm104_vm0, %v1615_v14  ;;  %1456 = vmatmul.mubr.msk.bf16.gmra.mrb[4].mxu1 %vm104_vm0, %v1615_v14  ;;  %v295_v40 = vld [vmem:[%s2678_s4] sm:$0xff]  ;;  %v2094_v41 = vld [vmem:[%s2677_s2 + $0xe8] ss:$16 sps:$4 sm:$0xff]   ;;  %v50_v49 = vsub.s32 1, %v45_v44 }
   0xf   :  { %463 = vmatpush1.bf16.msra.mxu0 %v1947_v17  ;;  %169 = vmatprep.mubr.bf16.mxu0 %v2684_v1  ;;  %v297_v42 = vpack.c.bf16 %v295_v40, %v295_v40  ;;  %v42_v48 = vld [vmem:[%s2679_s3] sm:$0xf] }
  0x10   :  { %504 = vmatpush1.bf16.msra.mxu1 %v1952_v18  ;;  %464 = vmatprep.subr.bf16.mxu0 %v1959_v19  ;;  %v2139_v50 = vrot.slane %v42_v48, %v54_v45  ;;  %v2145_v53 = vrot.slane %v42_v48, %v58_v46  ;;  %v47_v54 = vrot.slane %v42_v48, %v46_v47 }
  0x11   :  { %505 = vmatprep.subr.bf16.mxu1 %v1965_v20  ;;  %242 = vmatprep.mubr.bf16.mxu1 %v2684_v1  ;;  %v51_v57 = vrot.slane %v42_v48, %v50_v49 }
  0x13   :  { %465 = vmatpush1.bf16.msra.mxu0 %v1972_v21 }
  0x14   :  { %506 = vmatpush1.bf16.msra.mxu1 %v1978_v22  ;;  %466 = vmatprep.subr.bf16.mxu0 %v1986_v23 }
  0x15   :  { %507 = vmatprep.subr.bf16.mxu1 %v1993_v24 }
  0x16   :  { %1453 = vmatmul.mubr.msk.bf16.gmra.mrb[8].mxu0 %vm104_vm0, %v1628_v25  ;;  %1457 = vmatmul.mubr.msk.bf16.gmra.mrb[8].mxu1 %vm104_vm0, %v1628_v25 }
  0x17   :  { %467 = vmatpush1.bf16.msra.mxu0 %v2002_v26  ;;  %179 = vmatprep.mubr.bf16.mxu0 %v2684_v1 }
  0x18   :  { %508 = vmatpush1.bf16.msra.mxu1 %v2009_v27  ;;  %468 = vmatprep.subr.bf16.mxu0 %v2014_v28 }
  0x19   :  { %509 = vmatprep.subr.bf16.mxu1 %v2020_v29  ;;  %252 = vmatprep.mubr.bf16.mxu1 %v2684_v1 }
  0x1b   :  { %469 = vmatpush1.bf16.msra.mxu0 %v2028_v30 }
  0x1c   :  { %510 = vmatpush1.bf16.msra.mxu1 %v2033_v31  ;;  %470 = vmatprep.subr.bf16.mxu0 %v2041_v32 }
  0x1d   :  { %511 = vmatprep.subr.bf16.mxu1 %v2048_v33 }
  0x1e   :  { %1454 = vmatmul.mubr.msk.bf16.gmra.mrb[12].mxu0 %vm104_vm0, %v1641_v34  ;;  %1458 = vmatmul.mubr.msk.bf16.gmra.mrb[12].mxu1 %vm104_vm0, %v1641_v34 }
  0x1f   :  { %471 = vmatpush1.bf16.msra.mxu0 %v2057_v35  ;;  %490 = vmatprep.mubr.bf16.mxu0 %v2684_v1 }
  0x20   :  { %512 = vmatpush1.bf16.msra.mxu1 %v2064_v36  ;;  %472 = vmatprep.subr.bf16.mxu0 %v2069_v37 }
  0x21   :  { %513 = vmatprep.subr.bf16.mxu1 %v2075_v38  ;;  %531 = vmatprep.mubr.bf16.mxu1 %v2684_v1 }
  0x23   :  { %473 = vmatpush1.bf16.msra.mxu0 %v2083_v39 }
  0x24   :  { %514 = vmatpush1.bf16.msra.mxu1 %v2094_v41  ;;  %569 = vmatprep.subr.bf16.mxu0 %v1883_v6 }
  0x25   :  { %610 = vmatprep.subr.bf16.mxu1 %v1888_v7 }
  0x26   :  { %491 = vmatmul.mubr.bf16.vlgmr.msra.gmra.mrb[16].mxu0 %v297_v42 }
  0x27   :  { %532 = vmatmul.mubr.bf16.vlgmr.msra.gmra.mrb[16].mxu1 %v297_v42  ;;  %570 = vmatpush1.bf16.msra.mxu0 %v1893_v8 }
  0x28   :  { %611 = vmatpush1.bf16.msra.mxu1 %v1899_v9  ;;  %571 = vmatprep.subr.bf16.mxu0 %v1906_v10 }
  0x29   :  { %612 = vmatprep.subr.bf16.mxu1 %v1913_v11  ;;  %601 = vmatprep.mubr.bf16.mxu0 %v2684_v1 }
  0x2a   :  { %642 = vmatprep.mubr.bf16.mxu1 %v2684_v1 }
  0x2b   :  { %572 = vmatpush1.bf16.msra.mxu0 %v1918_v12 }
  0x2c   :  { %613 = vmatpush1.bf16.msra.mxu1 %v1923_v13  ;;  %573 = vmatprep.subr.bf16.mxu0 %v1935_v15 }
  0x2d   :  { %614 = vmatprep.subr.bf16.mxu1 %v1941_v16 }
  0x2f   :  { %574 = vmatpush1.bf16.msra.mxu0 %v1947_v17 }
  0x30   :  { %615 = vmatpush1.bf16.msra.mxu1 %v1952_v18  ;;  %575 = vmatprep.subr.bf16.mxu0 %v1959_v19 }
  0x31   :  { %616 = vmatprep.subr.bf16.mxu1 %v1965_v20 }
  0x33   :  { %576 = vmatpush1.bf16.msra.mxu0 %v1972_v21 }
  0x34   :  { %617 = vmatpush1.bf16.msra.mxu1 %v1978_v22  ;;  %577 = vmatprep.subr.bf16.mxu0 %v1986_v23 }
  0x35   :  { %618 = vmatprep.subr.bf16.mxu1 %v1993_v24 }
  0x37   :  { %578 = vmatpush1.bf16.msra.mxu0 %v2002_v26 }
  0x38   :  { %619 = vmatpush1.bf16.msra.mxu1 %v2009_v27  ;;  %579 = vmatprep.subr.bf16.mxu0 %v2014_v28 }
  0x39   :  { %620 = vmatprep.subr.bf16.mxu1 %v2020_v29 }
  0x3b   :  { %580 = vmatpush1.bf16.msra.mxu0 %v2028_v30 }
  0x3c   :  { %621 = vmatpush1.bf16.msra.mxu1 %v2033_v31  ;;  %581 = vmatprep.subr.bf16.mxu0 %v2041_v32 }
  0x3d   :  { %622 = vmatprep.subr.bf16.mxu1 %v2048_v33 }
  0x3f   :  { %582 = vmatpush1.bf16.msra.mxu0 %v2057_v35 }
  0x40   :  { %623 = vmatpush1.bf16.msra.mxu1 %v2064_v36  ;;  %583 = vmatprep.subr.bf16.mxu0 %v2069_v37 }
  0x41   :  { %624 = vmatprep.subr.bf16.mxu1 %v2075_v38 }
  0x43   :  { %584 = vmatpush1.bf16.msra.mxu0 %v2083_v39 }
  0x44   :  { %625 = vmatpush1.bf16.msra.mxu1 %v2094_v41  ;;  %680 = vmatprep.subr.bf16.mxu0 %v1883_v6 }
  0x45   :  { %721 = vmatprep.subr.bf16.mxu1 %v1888_v7 }
  0xd9   :  { %v2141_v51 = vpop.f32.mrb[0].mxu0  ;;  %v2143_v52 = vpop.f32.mrb[0].mxu1 }
  0xda   :  { %v153_v55 = vpop.f32.mrb[1].mxu0  ;;  %v226_v56 = vpop.f32.mrb[1].mxu1 }
  0xdb   :  { %v155_v58 = vpop.f32.mrb[2].mxu0  ;;  %v228_v59 = vpop.f32.mrb[2].mxu1 }
  0xdc   :  { %v2147_v60 = vadd.f32 %v155_v58, %v47_v54  ;;  %v157_v61 = vpop.f32.mrb[3].mxu0  ;;  %v2150_v62 = vadd.f32 %v228_v59, %v2139_v50  ;;  %v230_v63 = vpop.f32.mrb[3].mxu1 }
  0xdd   :  { %v2152_v0 = vadd.f32 %v157_v61, %v51_v57  ;;  %v2155_v2 = vadd.f32 %v230_v63, %v2145_v53 }
  0xe1   :  { %v161_v3 = vpop.f32.mrb[4].mxu0  ;;  %v234_v4 = vpop.f32.mrb[4].mxu1 }
  0xe2   :  { %v2157_v5 = vadd.f32 %v161_v3, %v47_v54  ;;  %v163_v14 = vpop.f32.mrb[5].mxu0  ;;  %v2160_v25 = vadd.f32 %v234_v4, %v2139_v50  ;;  %v236_v34 = vpop.f32.mrb[5].mxu1 }
  0xe3   :  { %v2162_v40 = vadd.f32 %v163_v14, %v51_v57  ;;  %v165_v42 = vpop.f32.mrb[6].mxu0  ;;  %v2165_v43 = vadd.f32 %v236_v34, %v2145_v53  ;;  %v238_v44 = vpop.f32.mrb[6].mxu1 }
  0xe4   :  { %v2167_v45 = vadd.f32 %v165_v42, %v47_v54  ;;  %v167_v46 = vpop.f32.mrb[7].mxu0  ;;  %v2170_v47 = vadd.f32 %v238_v44, %v2139_v50  ;;  %v240_v48 = vpop.f32.mrb[7].mxu1 }
  0xe5   :  { %2686 = vst [vmem:[#allocation2_spill] sm:$0xff] %v2165_v43  ;;  %v2172_v49 = vadd.f32 %v167_v46, %v51_v57  ;;  %v2175_v58 = vadd.f32 %v240_v48, %v2145_v53 }
  0xe6   :  { %2687 = vst [vmem:[#allocation3_spill] sm:$0xff] %v2167_v45  ;;  %2688 = vst [vmem:[#allocation4_spill] sm:$0xff] %v2170_v47 }
  0xe7   :  { %2689 = vst [vmem:[#allocation5_spill] sm:$0xff] %v2172_v49  ;;  %2690 = vst [vmem:[#allocation6_spill] sm:$0xff] %v2175_v58 }
  0xe9   :  { %v171_v59 = vpop.f32.mrb[8].mxu0  ;;  %v244_v61 = vpop.f32.mrb[8].mxu1 }
  0xea   :  { %v2177_v63 = vadd.f32 %v171_v59, %v47_v54  ;;  %v173_v3 = vpop.f32.mrb[9].mxu0  ;;  %v2180_v4 = vadd.f32 %v244_v61, %v2139_v50  ;;  %v246_v14 = vpop.f32.mrb[9].mxu1 }
  0xeb   :  { %v2182_v34 = vadd.f32 %v173_v3, %v51_v57  ;;  %v175_v42 = vpop.f32.mrb[10].mxu0  ;;  %v2185_v44 = vadd.f32 %v246_v14, %v2145_v53  ;;  %v248_v46 = vpop.f32.mrb[10].mxu1 }
  0xec   :  { %2691 = vst [vmem:[#allocation7_spill] sm:$0xff] %v2177_v63  ;;  %2692 = vst [vmem:[#allocation8_spill] sm:$0xff] %v2180_v4  ;;  %v2187_v1 = vadd.f32 %v175_v42, %v47_v54  ;;  %v177_v48 = vpop.f32.mrb[11].mxu0  ;;  %v2190_v58 = vadd.f32 %v248_v46, %v2139_v50  ;;  %v250_v59 = vpop.f32.mrb[11].mxu1 }
  0xed   :  { %2693 = vst [vmem:[#allocation9_spill] sm:$0xff] %v2182_v34  ;;  %2694 = vst [vmem:[#allocation10_spill] sm:$0xff] %v2185_v44  ;;  %v2192_v63 = vadd.f32 %v177_v48, %v51_v57  ;;  %v2195_v61 = vadd.f32 %v250_v59, %v2145_v53 }
  0xee   :  { %2695 = vst [vmem:[#allocation11_spill] sm:$0xff] %v2187_v1  ;;  %2696 = vst [vmem:[#allocation12_spill] sm:$0xff] %v2190_v58 }
  0xef   :  { %2697 = vst [vmem:[#allocation13_spill] sm:$0xff] %v2192_v63  ;;  %2698 = vst [vmem:[#allocation14_spill] sm:$0xff] %v2195_v61 }
  0xf1   :  { %v181_v4 = vpop.f32.mrb[12].mxu0  ;;  %v254_v3 = vpop.f32.mrb[12].mxu1 }
  0xf2   :  { %v2197_v34 = vadd.f32 %v181_v4, %v47_v54  ;;  %v183_v49 = vpop.f32.mrb[13].mxu0  ;;  %v2200_v14 = vadd.f32 %v254_v3, %v2139_v50  ;;  %v256_v42 = vpop.f32.mrb[13].mxu1 }
  0xf3   :  { %v2202_v1 = vadd.f32 %v183_v49, %v51_v57  ;;  %v185_v44 = vpop.f32.mrb[14].mxu0  ;;  %v2205_v46 = vadd.f32 %v256_v42, %v2145_v53  ;;  %v258_v48 = vpop.f32.mrb[14].mxu1  ;;  %v152_v49 = vadd.f32 %v2141_v51, %v47_v54  ;;  %v225_v42 = vadd.f32 %v2143_v52, %v2139_v50 }
  0xf4   :  { %2699 = vst [vmem:[#allocation15_spill] sm:$0xff] %v2197_v34  ;;  %2700 = vst [vmem:[#allocation16_spill] sm:$0xff] %v2200_v14  ;;  %v2207_v63 = vadd.f32 %v185_v44, %v47_v54  ;;  %v187_v59 = vpop.f32.mrb[15].mxu0  ;;  %v2210_v61 = vadd.f32 %v258_v48, %v2139_v50  ;;  %v260_v4 = vpop.f32.mrb[15].mxu1  ;;  %v227_v44 = vadd.f32 %v226_v56, %v2145_v53 }
  0xf5   :  { %2701 = vst [vmem:[#allocation17_spill] sm:$0xff] %v2202_v1  ;;  %2702 = vst [vmem:[#allocation18_spill] sm:$0xff] %v2205_v46  ;;  %v2212_v34 = vadd.f32 %v187_v59, %v51_v57  ;;  %v2215_v3 = vadd.f32 %v260_v4, %v2145_v53  ;;  %v154_v1 = vadd.f32 %v153_v55, %v51_v57  ;;  %v296_v57 = vld [vmem:[%s2680_s5] sm:$0xff] }
  0xf6   :  { %2703 = vst [vmem:[#allocation19_spill] sm:$0xff] %v2207_v63  ;;  %2704 = vst [vmem:[#allocation20_spill] sm:$0xff] %v2210_v61 }
  0xf7   :  { %2705 = vst [vmem:[#allocation21_spill] sm:$0xff] %v2212_v34  ;;  %2706 = vst [vmem:[#allocation22_spill] sm:$0xff] %v2215_v3 }
  0xf9   :  { %v492_v46 = vpop.f32.mrb[16].mxu0 }
  0xfa   :  { %v540_v63 = vadd.f32 %v492_v46, %v152_v49  ;;  %v533_v14 = vpop.f32.mrb[16].mxu1  ;;  %v494_v58 = vpop.f32.mrb[17].mxu0  ;;  %v2707_v49 = vmov 0  }
  0xfb   :  { %v542_v48 = vadd.f32 %v533_v14, %v225_v42  ;;  %v541_v61 = vadd.f32 %v494_v58, %v154_v1  ;;  %v535_v47 = vpop.f32.mrb[17].mxu1  ;;  %v496_v59 = vpop.f32.mrb[18].mxu0 }
  0xfc   :  { %v1491_v34 = vmul.f32 -1.442695, %v540_v63  ;;  %v543_v45 = vadd.f32 %v535_v47, %v227_v44  ;;  %v497_v4 = vpop.f32.mrb[19].mxu0  ;;  %v537_v3 = vpop.f32.mrb[18].mxu1 }
  0xfd   :  { %v1492_v43 = vmul.f32 -1.442695, %v541_v61  ;;  %v538_v51 = vpop.f32.mrb[19].mxu1 }
  0xfe   :  { %1654 = vpow2.f32 %v1491_v34  ;;  %v1493_v54 = vmul.f32 -1.442695, %v543_v45 }
  0xff   :  { %1656 = vpow2.f32 %v1492_v43 }
 0x100   :  { %1658 = vpow2.f32 %v1493_v54 }
 0x101   :  { %1660 = vtanh.f32 %v542_v48 }
 0x108   :  { %v1655_v50 = vpop.eup %1654 }
 0x109   :  { %v1657_v52 = vpop.eup %1656  ;;  %v547_v55 = vadd.f32 1.0, %v1655_v50 }
 0x10a   :  { %v553_v53 = vadd.f32 1.0, %v1657_v52  ;;  %v1659_v1 = vpop.eup %1658 }
 0x10b   :  { %1662 = vrcp.f32 %v547_v55  ;;  %v1661_v56 = vpop.eup %1660  ;;  %v560_v34 = vadd.f32 1.0, %v1659_v1 }
 0x10c   :  { %1664 = vrcp.f32 %v553_v53 }
 0x10d   :  { %1666 = vrcp.f32 %v560_v34 }
 0x115   :  { %v1663_v47 = vpop.eup %1662 }
 0x116   :  { %v1665_v58 = vpop.eup %1664  ;;  %v564_v63 = vmul.f32 %v1663_v47, %v1661_v56 }
 0x117   :  { %v563_v43 = vmul.f32 %v1665_v58, %v296_v57  ;;  %v1667_v61 = vpop.eup %1666 }
 0x119   :  { %v2224_v45 = vadd.f32 %v564_v63, %v563_v43 }
 0x11b   :  { %1668 = vtanh.f32 %v2224_v45 }
 0x125   :  { %v1669_v14 = vpop.eup %1668 }
 0x126   :  { %v567_v46 = vmul.f32 %v1669_v14, %v1667_v61 }
 0x128   :  { %v568_v3 = vpack.c.bf16 %v567_v46, %v567_v46 }
 0x12a   :  { %602 = vmatmul.mubr.bf16.vlgmr.msra.gmra.mrb[20].mxu0 %v568_v3  ;;  %643 = vmatmul.mubr.bf16.vlgmr.msra.gmra.mrb[20].mxu1 %v568_v3 }
 0x12b   :  { %681 = vmatpush1.bf16.msra.mxu0 %v1893_v8  ;;  %722 = vmatpush1.bf16.msra.mxu1 %v1899_v9 }
 0x12c   :  { %682 = vmatprep.subr.bf16.mxu0 %v1906_v10  ;;  %723 = vmatprep.subr.bf16.mxu1 %v1913_v11 }
 0x12d   :  { %712 = vmatprep.mubr.bf16.mxu0 %v2707_v49  ;;  %753 = vmatprep.mubr.bf16.mxu1 %v2707_v49 }
 0x12f   :  { %683 = vmatpush1.bf16.msra.mxu0 %v1918_v12  ;;  %724 = vmatpush1.bf16.msra.mxu1 %v1923_v13 }
 0x130   :  { %684 = vmatprep.subr.bf16.mxu0 %v1935_v15  ;;  %725 = vmatprep.subr.bf16.mxu1 %v1941_v16 }
 0x133   :  { %685 = vmatpush1.bf16.msra.mxu0 %v1947_v17  ;;  %726 = vmatpush1.bf16.msra.mxu1 %v1952_v18 }
 0x134   :  { %686 = vmatprep.subr.bf16.mxu0 %v1959_v19  ;;  %727 = vmatprep.subr.bf16.mxu1 %v1965_v20 }
 0x137   :  { %687 = vmatpush1.bf16.msra.mxu0 %v1972_v21  ;;  %728 = vmatpush1.bf16.msra.mxu1 %v1978_v22 }
 0x138   :  { %688 = vmatprep.subr.bf16.mxu0 %v1986_v23  ;;  %729 = vmatprep.subr.bf16.mxu1 %v1993_v24 }
 0x13b   :  { %689 = vmatpush1.bf16.msra.mxu0 %v2002_v26  ;;  %730 = vmatpush1.bf16.msra.mxu1 %v2009_v27 }
 0x13c   :  { %690 = vmatprep.subr.bf16.mxu0 %v2014_v28  ;;  %731 = vmatprep.subr.bf16.mxu1 %v2020_v29 }
 0x13f   :  { %691 = vmatpush1.bf16.msra.mxu0 %v2028_v30  ;;  %732 = vmatpush1.bf16.msra.mxu1 %v2033_v31 }
 0x140   :  { %692 = vmatprep.subr.bf16.mxu0 %v2041_v32  ;;  %733 = vmatprep.subr.bf16.mxu1 %v2048_v33 }
 0x143   :  { %693 = vmatpush1.bf16.msra.mxu0 %v2057_v35  ;;  %734 = vmatpush1.bf16.msra.mxu1 %v2064_v36 }
 0x144   :  { %694 = vmatprep.subr.bf16.mxu0 %v2069_v37  ;;  %735 = vmatprep.subr.bf16.mxu1 %v2075_v38 }
 0x147   :  { %695 = vmatpush1.bf16.msra.mxu0 %v2083_v39  ;;  %736 = vmatpush1.bf16.msra.mxu1 %v2094_v41 }
 0x148   :  { %791 = vmatprep.subr.bf16.mxu0 %v1883_v6  ;;  %832 = vmatprep.subr.bf16.mxu1 %v1888_v7 }
 0x1fd   :  { %v603_v42 = vpop.f32.mrb[20].mxu0  ;;  %v644_v44 = vpop.f32.mrb[20].mxu1 }
 0x1fe   :  { %v651_v48 = vadd.f32 %v603_v42, %v2147_v60  ;;  %v653_v59 = vadd.f32 %v644_v44, %v2150_v62  ;;  %v605_v4 = vpop.f32.mrb[21].mxu0  ;;  %v646_v51 = vpop.f32.mrb[21].mxu1 }
 0x1ff   :  { %v652_v54 = vadd.f32 %v605_v4, %v2152_v0  ;;  %v654_v50 = vadd.f32 %v646_v51, %v2155_v2  ;;  %v607_v52 = vpop.f32.mrb[22].mxu0  ;;  %v648_v55 = vpop.f32.mrb[22].mxu1 }
 0x200   :  { %v1494_v53 = vmul.f32 -1.442695, %v651_v48  ;;  %v608_v1 = vpop.f32.mrb[23].mxu0  ;;  %v649_v56 = vpop.f32.mrb[23].mxu1 }
 0x201   :  { %v1495_v57 = vmul.f32 -1.442695, %v652_v54  ;;  %v1496_v47 = vmul.f32 -1.442695, %v654_v50 }
 0x202   :  { %1670 = vpow2.f32 %v1494_v53  ;;  %v2708_v53 = vld [vmem:[#allocation2_spill] sm:$0xff] }
 0x203   :  { %1672 = vpow2.f32 %v1495_v57 }
 0x204   :  { %1674 = vpow2.f32 %v1496_v47 }
 0x205   :  { %1676 = vtanh.f32 %v653_v59 }
 0x20c   :  { %v1671_v58 = vpop.eup %1670 }
 0x20d   :  { %v1673_v63 = vpop.eup %1672  ;;  %v658_v60 = vadd.f32 1.0, %v1671_v58 }
 0x20e   :  { %v664_v62 = vadd.f32 1.0, %v1673_v63  ;;  %v1675_v0 = vpop.eup %1674 }
 0x20f   :  { %1678 = vrcp.f32 %v658_v60  ;;  %v1677_v34 = vpop.eup %1676  ;;  %v671_v14 = vadd.f32 1.0, %v1675_v0 }
 0x210   :  { %1680 = vrcp.f32 %v664_v62 }
 0x211   :  { %1682 = vrcp.f32 %v671_v14 }
 0x219   :  { %v1679_v2 = vpop.eup %1678 }
 0x21a   :  { %v1681_v43 = vpop.eup %1680  ;;  %v675_v61 = vmul.f32 %v1679_v2, %v1677_v34 }
 0x21b   :  { %v674_v46 = vmul.f32 %v1681_v43, %v2224_v45  ;;  %v1683_v42 = vpop.eup %1682 }
 0x21d   :  { %v2266_v3 = vadd.f32 %v675_v61, %v674_v46 }
 0x21f   :  { %1684 = vtanh.f32 %v2266_v3 }
 0x229   :  { %v1685_v44 = vpop.eup %1684 }
 0x22a   :  { %v678_v48 = vmul.f32 %v1685_v44, %v1683_v42 }
 0x22c   :  { %v679_v59 = vpack.c.bf16 %v678_v48, %v678_v48 }
 0x22e   :  { %713 = vmatmul.mubr.bf16.vlgmr.msra.gmra.mrb[24].mxu0 %v679_v59  ;;  %754 = vmatmul.mubr.bf16.vlgmr.msra.gmra.mrb[24].mxu1 %v679_v59 }
 0x22f   :  { %792 = vmatpush1.bf16.msra.mxu0 %v1893_v8  ;;  %833 = vmatpush1.bf16.msra.mxu1 %v1899_v9 }
 0x230   :  { %793 = vmatprep.subr.bf16.mxu0 %v1906_v10  ;;  %834 = vmatprep.subr.bf16.mxu1 %v1913_v11 }
 0x231   :  { %823 = vmatprep.mubr.bf16.mxu0 %v2707_v49  ;;  %864 = vmatprep.mubr.bf16.mxu1 %v2707_v49 }
 0x233   :  { %794 = vmatpush1.bf16.msra.mxu0 %v1918_v12  ;;  %835 = vmatpush1.bf16.msra.mxu1 %v1923_v13 }
 0x234   :  { %795 = vmatprep.subr.bf16.mxu0 %v1935_v15  ;;  %836 = vmatprep.subr.bf16.mxu1 %v1941_v16 }
 0x237   :  { %796 = vmatpush1.bf16.msra.mxu0 %v1947_v17  ;;  %837 = vmatpush1.bf16.msra.mxu1 %v1952_v18 }
 0x238   :  { %797 = vmatprep.subr.bf16.mxu0 %v1959_v19  ;;  %838 = vmatprep.subr.bf16.mxu1 %v1965_v20 }
 0x23b   :  { %798 = vmatpush1.bf16.msra.mxu0 %v1972_v21  ;;  %839 = vmatpush1.bf16.msra.mxu1 %v1978_v22 }
 0x23c   :  { %799 = vmatprep.subr.bf16.mxu0 %v1986_v23  ;;  %840 = vmatprep.subr.bf16.mxu1 %v1993_v24 }
 0x23f   :  { %800 = vmatpush1.bf16.msra.mxu0 %v2002_v26  ;;  %841 = vmatpush1.bf16.msra.mxu1 %v2009_v27 }
 0x240   :  { %801 = vmatprep.subr.bf16.mxu0 %v2014_v28  ;;  %842 = vmatprep.subr.bf16.mxu1 %v2020_v29 }
 0x243   :  { %802 = vmatpush1.bf16.msra.mxu0 %v2028_v30  ;;  %843 = vmatpush1.bf16.msra.mxu1 %v2033_v31 }
 0x244   :  { %803 = vmatprep.subr.bf16.mxu0 %v2041_v32  ;;  %844 = vmatprep.subr.bf16.mxu1 %v2048_v33 }
 0x247   :  { %804 = vmatpush1.bf16.msra.mxu0 %v2057_v35  ;;  %845 = vmatpush1.bf16.msra.mxu1 %v2064_v36 }
 0x248   :  { %805 = vmatprep.subr.bf16.mxu0 %v2069_v37  ;;  %846 = vmatprep.subr.bf16.mxu1 %v2075_v38 }
 0x24b   :  { %806 = vmatpush1.bf16.msra.mxu0 %v2083_v39  ;;  %847 = vmatpush1.bf16.msra.mxu1 %v2094_v41 }
 0x24c   :  { %902 = vmatprep.subr.bf16.mxu0 %v1883_v6  ;;  %943 = vmatprep.subr.bf16.mxu1 %v1888_v7 }
 0x301   :  { %v714_v45 = vpop.f32.mrb[24].mxu0  ;;  %v755_v4 = vpop.f32.mrb[24].mxu1 }
 0x302   :  { %v762_v51 = vadd.f32 %v714_v45, %v2157_v5  ;;  %v764_v54 = vadd.f32 %v755_v4, %v2160_v25  ;;  %v716_v50 = vpop.f32.mrb[25].mxu0  ;;  %v757_v52 = vpop.f32.mrb[25].mxu1 }
 0x303   :  { %v763_v55 = vadd.f32 %v716_v50, %v2162_v40  ;;  %v765_v1 = vadd.f32 %v757_v52, %v2708_v53  ;;  %v718_v56 = vpop.f32.mrb[26].mxu0  ;;  %v759_v57 = vpop.f32.mrb[26].mxu1  ;;  %v2710_v52 = vld [vmem:[#allocation4_spill] sm:$0xff] }
 0x304   :  { %v1497_v47 = vmul.f32 -1.442695, %v762_v51  ;;  %v719_v58 = vpop.f32.mrb[27].mxu0  ;;  %v760_v63 = vpop.f32.mrb[27].mxu1  ;;  %v2711_v56 = vld [vmem:[#allocation5_spill] sm:$0xff] }
 0x305   :  { %v1498_v60 = vmul.f32 -1.442695, %v763_v55  ;;  %v1499_v62 = vmul.f32 -1.442695, %v765_v1 }
 0x306   :  { %1686 = vpow2.f32 %v1497_v47  ;;  %v2712_v47 = vld [vmem:[#allocation6_spill] sm:$0xff] }
 0x307   :  { %1688 = vpow2.f32 %v1498_v60 }
 0x308   :  { %1690 = vpow2.f32 %v1499_v62 }
 0x309   :  { %1692 = vtanh.f32 %v764_v54  ;;  %v2709_v54 = vld [vmem:[#allocation3_spill] sm:$0xff] }
 0x310   :  { %v1687_v0 = vpop.eup %1686 }
 0x311   :  { %v1689_v34 = vpop.eup %1688  ;;  %v769_v5 = vadd.f32 1.0, %v1687_v0 }
 0x312   :  { %v775_v25 = vadd.f32 1.0, %v1689_v34  ;;  %v1691_v40 = vpop.eup %1690 }
 0x313   :  { %1694 = vrcp.f32 %v769_v5  ;;  %v1693_v2 = vpop.eup %1692  ;;  %v782_v46 = vadd.f32 1.0, %v1691_v40 }
 0x314   :  { %1696 = vrcp.f32 %v775_v25 }
 0x315   :  { %1698 = vrcp.f32 %v782_v46 }
 0x31d   :  { %v1695_v43 = vpop.eup %1694 }
 0x31e   :  { %v1697_v61 = vpop.eup %1696  ;;  %v786_v14 = vmul.f32 %v1695_v43, %v1693_v2 }
 0x31f   :  { %v785_v42 = vmul.f32 %v1697_v61, %v2266_v3  ;;  %v1699_v48 = vpop.eup %1698 }
 0x321   :  { %v2308_v44 = vadd.f32 %v786_v14, %v785_v42 }
 0x323   :  { %1700 = vtanh.f32 %v2308_v44 }
 0x32d   :  { %v1701_v59 = vpop.eup %1700 }
 0x32e   :  { %v789_v45 = vmul.f32 %v1701_v59, %v1699_v48 }
 0x330   :  { %v790_v4 = vpack.c.bf16 %v789_v45, %v789_v45 }
 0x332   :  { %824 = vmatmul.mubr.bf16.vlgmr.msra.gmra.mrb[28].mxu0 %v790_v4  ;;  %865 = vmatmul.mubr.bf16.vlgmr.msra.gmra.mrb[28].mxu1 %v790_v4 }
 0x333   :  { %903 = vmatpush1.bf16.msra.mxu0 %v1893_v8  ;;  %944 = vmatpush1.bf16.msra.mxu1 %v1899_v9 }
 0x334   :  { %904 = vmatprep.subr.bf16.mxu0 %v1906_v10  ;;  %945 = vmatprep.subr.bf16.mxu1 %v1913_v11 }
 0x335   :  { %934 = vmatprep.mubr.bf16.mxu0 %v2707_v49  ;;  %975 = vmatprep.mubr.bf16.mxu1 %v2707_v49 }
 0x337   :  { %905 = vmatpush1.bf16.msra.mxu0 %v1918_v12  ;;  %946 = vmatpush1.bf16.msra.mxu1 %v1923_v13 }
 0x338   :  { %906 = vmatprep.subr.bf16.mxu0 %v1935_v15  ;;  %947 = vmatprep.subr.bf16.mxu1 %v1941_v16 }
 0x33b   :  { %907 = vmatpush1.bf16.msra.mxu0 %v1947_v17  ;;  %948 = vmatpush1.bf16.msra.mxu1 %v1952_v18 }
 0x33c   :  { %908 = vmatprep.subr.bf16.mxu0 %v1959_v19  ;;  %949 = vmatprep.subr.bf16.mxu1 %v1965_v20 }
 0x33f   :  { %909 = vmatpush1.bf16.msra.mxu0 %v1972_v21  ;;  %950 = vmatpush1.bf16.msra.mxu1 %v1978_v22 }
 0x340   :  { %910 = vmatprep.subr.bf16.mxu0 %v1986_v23  ;;  %951 = vmatprep.subr.bf16.mxu1 %v1993_v24 }
 0x343   :  { %911 = vmatpush1.bf16.msra.mxu0 %v2002_v26  ;;  %952 = vmatpush1.bf16.msra.mxu1 %v2009_v27 }
 0x344   :  { %912 = vmatprep.subr.bf16.mxu0 %v2014_v28  ;;  %953 = vmatprep.subr.bf16.mxu1 %v2020_v29 }
 0x347   :  { %913 = vmatpush1.bf16.msra.mxu0 %v2028_v30  ;;  %954 = vmatpush1.bf16.msra.mxu1 %v2033_v31 }
 0x348   :  { %914 = vmatprep.subr.bf16.mxu0 %v2041_v32  ;;  %955 = vmatprep.subr.bf16.mxu1 %v2048_v33 }
 0x34b   :  { %915 = vmatpush1.bf16.msra.mxu0 %v2057_v35  ;;  %956 = vmatpush1.bf16.msra.mxu1 %v2064_v36 }
 0x34c   :  { %916 = vmatprep.subr.bf16.mxu0 %v2069_v37  ;;  %957 = vmatprep.subr.bf16.mxu1 %v2075_v38 }
 0x34f   :  { %917 = vmatpush1.bf16.msra.mxu0 %v2083_v39  ;;  %958 = vmatpush1.bf16.msra.mxu1 %v2094_v41 }
 0x350   :  { %1013 = vmatprep.subr.bf16.mxu0 %v1883_v6  ;;  %1054 = vmatprep.subr.bf16.mxu1 %v1888_v7 }
 0x405   :  { %v825_v3 = vpop.f32.mrb[28].mxu0  ;;  %v866_v51 = vpop.f32.mrb[28].mxu1 }
 0x406   :  { %v873_v50 = vadd.f32 %v825_v3, %v2709_v54  ;;  %v875_v55 = vadd.f32 %v866_v51, %v2710_v52  ;;  %v827_v53 = vpop.f32.mrb[29].mxu0  ;;  %v868_v1 = vpop.f32.mrb[29].mxu1 }
 0x407   :  { %v874_v57 = vadd.f32 %v827_v53, %v2711_v56  ;;  %v876_v58 = vadd.f32 %v868_v1, %v2712_v47  ;;  %v829_v63 = vpop.f32.mrb[30].mxu0  ;;  %v870_v60 = vpop.f32.mrb[30].mxu1 }
 0x408   :  { %v1500_v62 = vmul.f32 -1.442695, %v873_v50  ;;  %v830_v0 = vpop.f32.mrb[31].mxu0  ;;  %v871_v34 = vpop.f32.mrb[31].mxu1 }
 0x409   :  { %v1501_v6 = vmul.f32 -1.442695, %v874_v57  ;;  %v1502_v7 = vmul.f32 -1.442695, %v876_v58  ;;  %v2408_v34 = vld [vmem:[%s2677_s2] ss:$16 sps:$4 sm:$0xff]  }
 0x40a   :  { %1702 = vpow2.f32 %v1500_v62 }
 0x40b   :  { %1704 = vpow2.f32 %v1501_v6  ;;  %v2414_v6 = vld [vmem:[%s2677_s2 + $0x8] ss:$16 sps:$4 sm:$0xff]  }
 0x40c   :  { %1706 = vpow2.f32 %v1502_v7  ;;  %v2420_v7 = vld [vmem:[%s2677_s2 + $0x24] ss:$16 sps:$4 sm:$0xff]  }
 0x40d   :  { %1708 = vtanh.f32 %v875_v55 }
 0x414   :  { %v1703_v5 = vpop.eup %1702 }
 0x415   :  { %v1705_v25 = vpop.eup %1704  ;;  %v880_v40 = vadd.f32 1.0, %v1703_v5  ;;  %v2426_v5 = vld [vmem:[%s2677_s2 + $0x2c] ss:$16 sps:$4 sm:$0xff]  }
 0x416   :  { %v886_v2 = vadd.f32 1.0, %v1705_v25  ;;  %v1707_v43 = vpop.eup %1706  ;;  %v2434_v25 = vld [vmem:[%s2677_s2 + $0x20] ss:$16 sps:$4 sm:$0xff]  }
 0x417   :  { %1710 = vrcp.f32 %v880_v40  ;;  %v1709_v61 = vpop.eup %1708  ;;  %v893_v48 = vadd.f32 1.0, %v1707_v43  ;;  %v2440_v40 = vld [vmem:[%s2677_s2 + $0x28] ss:$16 sps:$4 sm:$0xff]   ;;  %v2452_v43 = vld [vmem:[%s2677_s2 + $0x4c] ss:$16 sps:$4 sm:$0xff]  }
 0x418   :  { %1712 = vrcp.f32 %v886_v2  ;;  %v2446_v2 = vld [vmem:[%s2677_s2 + $0x44] ss:$16 sps:$4 sm:$0xff]  }
 0x419   :  { %1714 = vrcp.f32 %v893_v48  ;;  %v2482_v48 = vld [vmem:[%s2677_s2 + $0x60] ss:$16 sps:$4 sm:$0xff]  }
 0x421   :  { %v1711_v14 = vpop.eup %1710 }
 0x422   :  { %v1713_v46 = vpop.eup %1712  ;;  %v897_v42 = vmul.f32 %v1711_v14, %v1709_v61  ;;  %v2458_v61 = vld [vmem:[%s2677_s2 + $0x40] ss:$16 sps:$4 sm:$0xff]   ;;  %v2464_v14 = vld [vmem:[%s2677_s2 + $0x48] ss:$16 sps:$4 sm:$0xff]  }
 0x423   :  { %v896_v59 = vmul.f32 %v1713_v46, %v2308_v44  ;;  %v1715_v4 = vpop.eup %1714  ;;  %v2470_v46 = vld [vmem:[%s2677_s2 + $0x64] ss:$16 sps:$4 sm:$0xff]  }
 0x425   :  { %v2350_v45 = vadd.f32 %v897_v42, %v896_v59  ;;  %v2476_v42 = vld [vmem:[%s2677_s2 + $0x6c] ss:$16 sps:$4 sm:$0xff]   ;;  %v2488_v59 = vld [vmem:[%s2677_s2 + $0x68] ss:$16 sps:$4 sm:$0xff]  }
 0x427   :  { %1716 = vtanh.f32 %v2350_v45 }
 0x431   :  { %v1717_v3 = vpop.eup %1716 }
 0x432   :  { %v900_v51 = vmul.f32 %v1717_v3, %v1715_v4  ;;  %v2500_v4 = vld [vmem:[%s2677_s2 + $0x8c] ss:$16 sps:$4 sm:$0xff]   ;;  %v2506_v3 = vld [vmem:[%s2677_s2 + $0x80] ss:$16 sps:$4 sm:$0xff]  }
 0x434   :  { %v901_v54 = vpack.c.bf16 %v900_v51, %v900_v51  ;;  %v2512_v51 = vld [vmem:[%s2677_s2 + $0x88] ss:$16 sps:$4 sm:$0xff]  }
 0x436   :  { %935 = vmatmul.mubr.bf16.vlgmr.msra.gmra.mrb[32].mxu0 %v901_v54  ;;  %976 = vmatmul.mubr.bf16.vlgmr.msra.gmra.mrb[32].mxu1 %v901_v54  ;;  %v2518_v54 = vld [vmem:[%s2677_s2 + $0xa4] ss:$16 sps:$4 sm:$0xff]  }
 0x437   :  { %1014 = vmatpush1.bf16.msra.mxu0 %v1893_v8  ;;  %1055 = vmatpush1.bf16.msra.mxu1 %v1899_v9  ;;  %v2388_v8 = vld [vmem:[%s2677_s2 + $0x4] ss:$16 sps:$4 sm:$0xff]   ;;  %v2394_v9 = vld [vmem:[%s2677_s2 + $0xc] ss:$16 sps:$4 sm:$0xff]  }
 0x438   :  { %1015 = vmatprep.subr.bf16.mxu0 %v1906_v10  ;;  %1056 = vmatprep.subr.bf16.mxu1 %v1913_v11 }
 0x439   :  { %1045 = vmatprep.mubr.bf16.mxu0 %v2707_v49  ;;  %1086 = vmatprep.mubr.bf16.mxu1 %v2707_v49 }
 0x43b   :  { %1016 = vmatpush1.bf16.msra.mxu0 %v1918_v12  ;;  %1057 = vmatpush1.bf16.msra.mxu1 %v1923_v13  ;;  %v2713_v12 = vld [vmem:[#allocation7_spill] sm:$0xff] }
 0x43c   :  { %1017 = vmatprep.subr.bf16.mxu0 %v1935_v15  ;;  %1058 = vmatprep.subr.bf16.mxu1 %v1941_v16  ;;  %v2714_v15 = vld [vmem:[#allocation8_spill] sm:$0xff] }
 0x43f   :  { %1018 = vmatpush1.bf16.msra.mxu0 %v1947_v17  ;;  %1059 = vmatpush1.bf16.msra.mxu1 %v1952_v18 }
 0x440   :  { %1019 = vmatprep.subr.bf16.mxu0 %v1959_v19  ;;  %1060 = vmatprep.subr.bf16.mxu1 %v1965_v20  ;;  %v2715_v19 = vld [vmem:[#allocation9_spill] sm:$0xff] }
 0x443   :  { %1020 = vmatpush1.bf16.msra.mxu0 %v1972_v21  ;;  %1061 = vmatpush1.bf16.msra.mxu1 %v1978_v22  ;;  %v2716_v21 = vld [vmem:[#allocation10_spill] sm:$0xff] }
 0x444   :  { %1021 = vmatprep.subr.bf16.mxu0 %v1986_v23  ;;  %1062 = vmatprep.subr.bf16.mxu1 %v1993_v24 }
 0x447   :  { %1022 = vmatpush1.bf16.msra.mxu0 %v2002_v26  ;;  %1063 = vmatpush1.bf16.msra.mxu1 %v2009_v27 }
 0x448   :  { %1023 = vmatprep.subr.bf16.mxu0 %v2014_v28  ;;  %1064 = vmatprep.subr.bf16.mxu1 %v2020_v29 }
 0x44b   :  { %1024 = vmatpush1.bf16.msra.mxu0 %v2028_v30  ;;  %1065 = vmatpush1.bf16.msra.mxu1 %v2033_v31 }
 0x44c   :  { %1025 = vmatprep.subr.bf16.mxu0 %v2041_v32  ;;  %1066 = vmatprep.subr.bf16.mxu1 %v2048_v33 }
 0x44f   :  { %1026 = vmatpush1.bf16.msra.mxu0 %v2057_v35  ;;  %1067 = vmatpush1.bf16.msra.mxu1 %v2064_v36 }
 0x450   :  { %1027 = vmatprep.subr.bf16.mxu0 %v2069_v37  ;;  %1068 = vmatprep.subr.bf16.mxu1 %v2075_v38 }
 0x453   :  { %1028 = vmatpush1.bf16.msra.mxu0 %v2083_v39  ;;  %1069 = vmatpush1.bf16.msra.mxu1 %v2094_v41 }
 0x454   :  { %1124 = vmatprep.subr.bf16.mxu0 %v2388_v8  ;;  %1165 = vmatprep.subr.bf16.mxu1 %v2394_v9 }
 0x509   :  { %v936_v10 = vpop.f32.mrb[32].mxu0  ;;  %v977_v11 = vpop.f32.mrb[32].mxu1 }
 0x50a   :  { %v984_v13 = vadd.f32 %v936_v10, %v2713_v12  ;;  %v986_v16 = vadd.f32 %v977_v11, %v2714_v15  ;;  %v938_v17 = vpop.f32.mrb[33].mxu0  ;;  %v979_v18 = vpop.f32.mrb[33].mxu1  ;;  %v2524_v10 = vld [vmem:[%s2677_s2 + $0xac] ss:$16 sps:$4 sm:$0xff]   ;;  %v2530_v11 = vld [vmem:[%s2677_s2 + $0xa0] ss:$16 sps:$4 sm:$0xff]  }
 0x50b   :  { %v985_v20 = vadd.f32 %v938_v17, %v2715_v19  ;;  %v987_v22 = vadd.f32 %v979_v18, %v2716_v21  ;;  %v940_v23 = vpop.f32.mrb[34].mxu0  ;;  %v981_v24 = vpop.f32.mrb[34].mxu1  ;;  %v2536_v12 = vld [vmem:[%s2677_s2 + $0xa8] ss:$16 sps:$4 sm:$0xff]   ;;  %v2718_v18 = vld [vmem:[#allocation12_spill] sm:$0xff]  ;;  %v2720_v21 = vld [vmem:[#allocation14_spill] sm:$0xff] }
 0x50c   :  { %v1503_v26 = vmul.f32 -1.442695, %v984_v13  ;;  %v941_v27 = vpop.f32.mrb[35].mxu0  ;;  %v982_v28 = vpop.f32.mrb[35].mxu1  ;;  %v2542_v13 = vld [vmem:[%s2677_s2 + $0xc4] ss:$16 sps:$4 sm:$0xff]  }
 0x50d   :  { %v1504_v29 = vmul.f32 -1.442695, %v985_v20  ;;  %v1505_v30 = vmul.f32 -1.442695, %v987_v22  ;;  %v2717_v17 = vld [vmem:[#allocation11_spill] sm:$0xff]  ;;  %v2719_v20 = vld [vmem:[#allocation13_spill] sm:$0xff] }
 0x50e   :  { %1718 = vpow2.f32 %v1503_v26 }
 0x50f   :  { %1720 = vpow2.f32 %v1504_v29 }
 0x510   :  { %1722 = vpow2.f32 %v1505_v30 }
 0x511   :  { %1724 = vtanh.f32 %v986_v16 }
 0x518   :  { %v1719_v31 = vpop.eup %1718 }
 0x519   :  { %v1721_v32 = vpop.eup %1720  ;;  %v991_v44 = vadd.f32 1.0, %v1719_v31 }
 0x51a   :  { %v997_v50 = vadd.f32 1.0, %v1721_v32  ;;  %v1723_v52 = vpop.eup %1722 }
 0x51b   :  { %1726 = vrcp.f32 %v991_v44  ;;  %v1725_v55 = vpop.eup %1724  ;;  %v1004_v57 = vadd.f32 1.0, %v1723_v52 }
 0x51c   :  { %1728 = vrcp.f32 %v997_v50 }
 0x51d   :  { %1730 = vrcp.f32 %v1004_v57 }
 0x525   :  { %v1727_v53 = vpop.eup %1726 }
 0x526   :  { %v1729_v1 = vpop.eup %1728  ;;  %v1008_v56 = vmul.f32 %v1727_v53, %v1725_v55 }
 0x527   :  { %v1007_v47 = vmul.f32 %v1729_v1, %v2350_v45  ;;  %v1731_v63 = vpop.eup %1730  ;;  %v2494_v45 = vld [vmem:[%s2677_s2 + $0x84] ss:$16 sps:$4 sm:$0xff]  }
 0x529   :  { %v2402_v58 = vadd.f32 %v1008_v56, %v1007_v47 }
 0x52b   :  { %1732 = vtanh.f32 %v2402_v58 }
 0x535   :  { %v1733_v60 = vpop.eup %1732 }
 0x536   :  { %v1011_v62 = vmul.f32 %v1733_v60, %v1731_v63  ;;  %v1809_v63 = vld [vmem:[%s2677_s2 + $0xc8] ss:$16 sps:$4 sm:$0xff]   ;;  %v1810_v60 = vld [vmem:[%s2677_s2 + $0xe4] ss:$16 sps:$4 sm:$0xff]  }
 0x538   :  { %v1012_v0 = vpack.c.bf16 %v1011_v62, %v1011_v62  ;;  %v1811_v62 = vld [vmem:[%s2677_s2 + $0xec] ss:$16 sps:$4 sm:$0xff]  }
 0x53a   :  { %1046 = vmatmul.mubr.bf16.vlgmr.msra.gmra.mrb[36].mxu0 %v1012_v0  ;;  %1087 = vmatmul.mubr.bf16.vlgmr.msra.gmra.mrb[36].mxu1 %v1012_v0  ;;  %v1812_v0 = vld [vmem:[%s2677_s2 + $0xe0] ss:$16 sps:$4 sm:$0xff]  }
 0x53b   :  { %1125 = vmatpush1.bf16.msra.mxu0 %v2408_v34  ;;  %1166 = vmatpush1.bf16.msra.mxu1 %v2414_v6 }
 0x53c   :  { %1126 = vmatprep.subr.bf16.mxu0 %v2420_v7  ;;  %1167 = vmatprep.subr.bf16.mxu1 %v2426_v5 }
 0x53d   :  { %1156 = vmatprep.mubr.bf16.mxu0 %v2707_v49  ;;  %1197 = vmatprep.mubr.bf16.mxu1 %v2707_v49 }
 0x53f   :  { %1127 = vmatpush1.bf16.msra.mxu0 %v2434_v25  ;;  %1168 = vmatpush1.bf16.msra.mxu1 %v2440_v40 }
 0x540   :  { %1128 = vmatprep.subr.bf16.mxu0 %v2446_v2  ;;  %1169 = vmatprep.subr.bf16.mxu1 %v2452_v43 }
 0x543   :  { %1129 = vmatpush1.bf16.msra.mxu0 %v2458_v61  ;;  %1170 = vmatpush1.bf16.msra.mxu1 %v2464_v14 }
 0x544   :  { %1130 = vmatprep.subr.bf16.mxu0 %v2470_v46  ;;  %1171 = vmatprep.subr.bf16.mxu1 %v2476_v42 }
 0x547   :  { %1131 = vmatpush1.bf16.msra.mxu0 %v2482_v48  ;;  %1172 = vmatpush1.bf16.msra.mxu1 %v2488_v59 }
 0x548   :  { %1132 = vmatprep.subr.bf16.mxu0 %v2494_v45  ;;  %1173 = vmatprep.subr.bf16.mxu1 %v2500_v4 }
 0x54b   :  { %1133 = vmatpush1.bf16.msra.mxu0 %v2506_v3  ;;  %1174 = vmatpush1.bf16.msra.mxu1 %v2512_v51 }
 0x54c   :  { %1134 = vmatprep.subr.bf16.mxu0 %v2518_v54  ;;  %1175 = vmatprep.subr.bf16.mxu1 %v2524_v10 }
 0x54f   :  { %1135 = vmatpush1.bf16.msra.mxu0 %v2530_v11  ;;  %1176 = vmatpush1.bf16.msra.mxu1 %v2536_v12 }
 0x550   :  { %1136 = vmatprep.subr.bf16.mxu0 %v2542_v13  ;;  %1177 = vmatprep.subr.bf16.mxu1 %v2048_v33 }
 0x553   :  { %1137 = vmatpush1.bf16.msra.mxu0 %v2057_v35  ;;  %1178 = vmatpush1.bf16.msra.mxu1 %v2064_v36 }
 0x554   :  { %1138 = vmatprep.subr.bf16.mxu0 %v2069_v37  ;;  %1179 = vmatprep.subr.bf16.mxu1 %v2075_v38 }
 0x557   :  { %1139 = vmatpush1.bf16.msra.mxu0 %v2083_v39  ;;  %1180 = vmatpush1.bf16.msra.mxu1 %v2094_v41 }
 0x558   :  { %1235 = vmatprep.subr.bf16.mxu0 %v2388_v8  ;;  %1276 = vmatprep.subr.bf16.mxu1 %v2394_v9 }
 0x60d   :  { %v1047_v15 = vpop.f32.mrb[36].mxu0  ;;  %v1088_v16 = vpop.f32.mrb[36].mxu1 }
 0x60e   :  { %v1095_v33 = vadd.f32 %v1047_v15, %v2717_v17  ;;  %v1097_v35 = vadd.f32 %v1088_v16, %v2718_v18  ;;  %v1049_v19 = vpop.f32.mrb[37].mxu0  ;;  %v1090_v36 = vpop.f32.mrb[37].mxu1 }
 0x60f   :  { %v1096_v37 = vadd.f32 %v1049_v19, %v2719_v20  ;;  %v1098_v38 = vadd.f32 %v1090_v36, %v2720_v21  ;;  %v1051_v22 = vpop.f32.mrb[38].mxu0  ;;  %v1092_v39 = vpop.f32.mrb[38].mxu1 }
 0x610   :  { %v1506_v23 = vmul.f32 -1.442695, %v1095_v33  ;;  %v1052_v41 = vpop.f32.mrb[39].mxu0  ;;  %v1093_v24 = vpop.f32.mrb[39].mxu1  ;;  %v1345_v39 = vld [vmem:[%s2681_s6] sm:$0xff] }
 0x611   :  { %v1507_v8 = vmul.f32 -1.442695, %v1096_v37  ;;  %v1508_v9 = vmul.f32 -1.442695, %v1098_v38  ;;  %v1815_v24 = vmov 0.0|0.0  }
 0x612   :  { %1734 = vpow2.f32 %v1506_v23  ;;  %v1346_v23 = vld [vmem:[%s2681_s6 + $0x8] sm:$0xff] }
 0x613   :  { %1736 = vpow2.f32 %v1507_v8  ;;  %v1569_v41 = vpack.c.bf16 %v1346_v23, %v1345_v39  ;;  %v1347_v8 = vld [vmem:[%s2681_s6 + $0x10] sm:$0xff] }
 0x614   :  { %1738 = vpow2.f32 %v1508_v9  ;;  %v1348_v9 = vld [vmem:[%s2681_s6 + $0x18] sm:$0xff] }
 0x615   :  { %1740 = vtanh.f32 %v1097_v35 }
 0x61c   :  { %v1735_v26 = vpop.eup %1734 }
 0x61d   :  { %v1737_v27 = vpop.eup %1736  ;;  %v1102_v28 = vadd.f32 1.0, %v1735_v26  ;;  %v1572_v26 = vpack.c.bf16 %v1348_v9, %v1347_v8 }
 0x61e   :  { %v1108_v29 = vadd.f32 1.0, %v1737_v27  ;;  %v1739_v30 = vpop.eup %1738  ;;  %v1349_v27 = vld [vmem:[%s2681_s6 + $0x20] sm:$0xff] }
 0x61f   :  { %1742 = vrcp.f32 %v1102_v28  ;;  %v1741_v31 = vpop.eup %1740  ;;  %v1115_v52 = vadd.f32 1.0, %v1739_v30  ;;  %v1350_v28 = vld [vmem:[%s2681_s6 + $0x28] sm:$0xff]  ;;  %v1351_v30 = vld [vmem:[%s2681_s6 + $0x30] sm:$0xff] }
 0x620   :  { %1744 = vrcp.f32 %v1108_v29  ;;  %v1575_v29 = vpack.c.bf16 %v1350_v28, %v1349_v27 }
 0x621   :  { %1746 = vrcp.f32 %v1115_v52 }
 0x629   :  { %v1743_v32 = vpop.eup %1742 }
 0x62a   :  { %v1745_v44 = vpop.eup %1744  ;;  %v1119_v50 = vmul.f32 %v1743_v32, %v1741_v31  ;;  %v1352_v31 = vld [vmem:[%s2681_s6 + $0x38] sm:$0xff] }
 0x62b   :  { %v1118_v55 = vmul.f32 %v1745_v44, %v2402_v58  ;;  %v1747_v1 = vpop.eup %1746  ;;  %v1808_v58 = vld [vmem:[%s2677_s2 + $0xc0] ss:$16 sps:$4 sm:$0xff]   ;;  %v1578_v32 = vpack.c.bf16 %v1352_v31, %v1351_v30 }
 0x62c   :  { %v1353_v44 = vld [vmem:[%s2681_s6 + $0x40] sm:$0xff] }
 0x62d   :  { %v2559_v53 = vadd.f32 %v1119_v50, %v1118_v55  ;;  %v1354_v50 = vld [vmem:[%s2681_s6 + $0x48] sm:$0xff]  ;;  %v1355_v55 = vld [vmem:[%s2681_s6 + $0x50] sm:$0xff] }
 0x62e   :  { %v1581_v52 = vpack.c.bf16 %v1354_v50, %v1353_v44 }
 0x62f   :  { %1748 = vtanh.f32 %v2559_v53 }
 0x639   :  { %v1749_v56 = vpop.eup %1748 }
 0x63a   :  { %v1122_v57 = vmul.f32 %v1749_v56, %v1747_v1  ;;  %v1357_v1 = vld [vmem:[%s2681_s6 + $0x60] sm:$0xff] }
 0x63c   :  { %v1123_v47 = vpack.c.bf16 %v1122_v57, %v1122_v57  ;;  %v1358_v57 = vld [vmem:[%s2681_s6 + $0x68] sm:$0xff] }
 0x63e   :  { %1157 = vmatmul.mubr.bf16.vlgmr.msra.gmra.mrb[40].mxu0 %v1123_v47  ;;  %1198 = vmatmul.mubr.bf16.vlgmr.msra.gmra.mrb[40].mxu1 %v1123_v47  ;;  %v1817_v47 = vmov 0.0  }
 0x63f   :  { %1236 = vmatpush1.bf16.msra.mxu0 %v2408_v34  ;;  %1277 = vmatpush1.bf16.msra.mxu1 %v2414_v6  ;;  %v1813_v34 = vld [vmem:[%s2677_s2 + $0xe8] ss:$16 sps:$4 sm:$0xff]  }
 0x640   :  { %1237 = vmatprep.subr.bf16.mxu0 %v2420_v7  ;;  %1278 = vmatprep.subr.bf16.mxu1 %v2426_v5  ;;  %v2721_v5 = vld [vmem:[#allocation15_spill] sm:$0xff] }
 0x641   :  { %1267 = vmatprep.mubr.bf16.mxu0 %v2707_v49  ;;  %1308 = vmatprep.mubr.bf16.mxu1 %v2707_v49  ;;  %v1807_v49 = vld [vmem:[%s2677_s2 + $0xcc] ss:$16 sps:$4 sm:$0xff]  }
 0x643   :  { %1238 = vmatpush1.bf16.msra.mxu0 %v2434_v25  ;;  %1279 = vmatpush1.bf16.msra.mxu1 %v2440_v40  ;;  %v2722_v40 = vld [vmem:[#allocation16_spill] sm:$0xff] }
 0x644   :  { %1239 = vmatprep.subr.bf16.mxu0 %v2446_v2  ;;  %1280 = vmatprep.subr.bf16.mxu1 %v2452_v43 }
 0x647   :  { %1240 = vmatpush1.bf16.msra.mxu0 %v2458_v61  ;;  %1281 = vmatpush1.bf16.msra.mxu1 %v2464_v14  ;;  %v2723_v14 = vld [vmem:[#allocation17_spill] sm:$0xff] }
 0x648   :  { %1241 = vmatprep.subr.bf16.mxu0 %v2470_v46  ;;  %1282 = vmatprep.subr.bf16.mxu1 %v2476_v42  ;;  %v2724_v42 = vld [vmem:[#allocation18_spill] sm:$0xff] }
 0x64b   :  { %1242 = vmatpush1.bf16.msra.mxu0 %v2482_v48  ;;  %1283 = vmatpush1.bf16.msra.mxu1 %v2488_v59 }
 0x64c   :  { %1243 = vmatprep.subr.bf16.mxu0 %v2494_v45  ;;  %1284 = vmatprep.subr.bf16.mxu1 %v2500_v4 }
 0x64f   :  { %1244 = vmatpush1.bf16.msra.mxu0 %v2506_v3  ;;  %1285 = vmatpush1.bf16.msra.mxu1 %v2512_v51 }
 0x650   :  { %1245 = vmatprep.subr.bf16.mxu0 %v2518_v54  ;;  %1286 = vmatprep.subr.bf16.mxu1 %v2524_v10 }
 0x653   :  { %1246 = vmatpush1.bf16.msra.mxu0 %v2530_v11  ;;  %1287 = vmatpush1.bf16.msra.mxu1 %v2536_v12 }
 0x654   :  { %1247 = vmatprep.subr.bf16.mxu0 %v2542_v13  ;;  %1288 = vmatprep.subr.bf16.mxu1 %v1807_v49  ;;  %v1587_v49 = vpack.c.bf16 %v1358_v57, %v1357_v1 }
 0x657   :  { %1248 = vmatpush1.bf16.msra.mxu0 %v1808_v58  ;;  %1289 = vmatpush1.bf16.msra.mxu1 %v1809_v63  ;;  %v1359_v58 = vld [vmem:[%s2681_s6 + $0x70] sm:$0xff]  ;;  %v1360_v63 = vld [vmem:[%s2681_s6 + $0x78] sm:$0xff] }
 0x658   :  { %1249 = vmatprep.subr.bf16.mxu0 %v1810_v60  ;;  %1290 = vmatprep.subr.bf16.mxu1 %v1811_v62  ;;  %v1590_v60 = vpack.c.bf16 %v1360_v63, %v1359_v58 }
 0x65b   :  { %1250 = vmatpush1.bf16.msra.mxu0 %v1812_v0  ;;  %1291 = vmatpush1.bf16.msra.mxu1 %v1813_v34  ;;  %v2725_v34 = vld [vmem:[#allocation19_spill] sm:$0xff] }
 0x65c   :  { %1568 = vmatprep.subr.bf16.mxu0 %v1815_v24 }
 0x711   :  { %v1158_v6 = vpop.f32.mrb[40].mxu0  ;;  %v1199_v7 = vpop.f32.mrb[40].mxu1 }
 0x712   :  { %v1206_v25 = vadd.f32 %v1158_v6, %v2721_v5  ;;  %v1208_v2 = vadd.f32 %v1199_v7, %v2722_v40  ;;  %v1160_v43 = vpop.f32.mrb[41].mxu0  ;;  %v1201_v61 = vpop.f32.mrb[41].mxu1  ;;  %v2726_v7 = vld [vmem:[#allocation20_spill] sm:$0xff] }
 0x713   :  { %v1207_v46 = vadd.f32 %v1160_v43, %v2723_v14  ;;  %v1209_v48 = vadd.f32 %v1201_v61, %v2724_v42  ;;  %v1162_v59 = vpop.f32.mrb[42].mxu0  ;;  %v1203_v45 = vpop.f32.mrb[42].mxu1  ;;  %v2728_v61 = vld [vmem:[#allocation22_spill] sm:$0xff] }
 0x714   :  { %v1509_v4 = vmul.f32 -1.442695, %v1206_v25  ;;  %v1163_v3 = vpop.f32.mrb[43].mxu0  ;;  %v1204_v51 = vpop.f32.mrb[43].mxu1 }
 0x715   :  { %v1510_v54 = vmul.f32 -1.442695, %v1207_v46  ;;  %v1511_v10 = vmul.f32 -1.442695, %v1209_v48 }
 0x716   :  { %1750 = vpow2.f32 %v1509_v4 }
 0x717   :  { %1752 = vpow2.f32 %v1510_v54 }
 0x718   :  { %1754 = vpow2.f32 %v1511_v10 }
 0x719   :  { %1756 = vtanh.f32 %v1208_v2  ;;  %v2727_v2 = vld [vmem:[#allocation21_spill] sm:$0xff] }
 0x720   :  { %v1751_v11 = vpop.eup %1750 }
 0x721   :  { %v1753_v12 = vpop.eup %1752  ;;  %v1213_v13 = vadd.f32 1.0, %v1751_v11 }
 0x722   :  { %v1219_v15 = vadd.f32 1.0, %v1753_v12  ;;  %v1755_v16 = vpop.eup %1754 }
 0x723   :  { %1758 = vrcp.f32 %v1213_v13  ;;  %v1757_v17 = vpop.eup %1756  ;;  %v1226_v19 = vadd.f32 1.0, %v1755_v16 }
 0x724   :  { %1760 = vrcp.f32 %v1219_v15 }
 0x725   :  { %1762 = vrcp.f32 %v1226_v19 }
 0x72d   :  { %v1759_v33 = vpop.eup %1758 }
 0x72e   :  { %v1761_v18 = vpop.eup %1760  ;;  %v1230_v35 = vmul.f32 %v1759_v33, %v1757_v17 }
 0x72f   :  { %v1229_v36 = vmul.f32 %v1761_v18, %v2559_v53  ;;  %v1763_v37 = vpop.eup %1762  ;;  %v1356_v53 = vld [vmem:[%s2681_s6 + $0x58] sm:$0xff] }
 0x730   :  { %v1584_v56 = vpack.c.bf16 %v1356_v53, %v1355_v55 }
 0x731   :  { %v2613_v20 = vadd.f32 %v1230_v35, %v1229_v36 }
 0x733   :  { %1764 = vtanh.f32 %v2613_v20 }
 0x73d   :  { %v1765_v21 = vpop.eup %1764 }
 0x73e   :  { %v1233_v38 = vmul.f32 %v1765_v21, %v1763_v37  ;;  %v1515_v21 = vld [vmem:[%s2682_s7] ss:$0 sm:$0xff] }
 0x740   :  { %v1234_v22 = vpack.c.bf16 %v1233_v38, %v1233_v38 }
 0x742   :  { %1268 = vmatmul.mubr.bf16.vlgmr.msra.gmra.mrb[44].mxu0 %v1234_v22  ;;  %1309 = vmatmul.mubr.bf16.vlgmr.msra.gmra.mrb[44].mxu1 %v1234_v22 }
 0x743   :  { %1570 = vmatpush3.bf16.msra.mxu0 %v1569_v41  ;;  %1565 = vmatprep.mubr.msk.f32.mxu0 %vm1816_vm1, %v1817_v47 }
 0x744   :  { %1571 = vmatprep.subr.bf16.mxu0 %v1815_v24 }
 0x747   :  { %1573 = vmatpush3.bf16.msra.mxu0 %v1572_v26 }
 0x748   :  { %1574 = vmatprep.subr.bf16.mxu0 %v1815_v24 }
 0x74b   :  { %1576 = vmatpush3.bf16.msra.mxu0 %v1575_v29 }
 0x74c   :  { %1577 = vmatprep.subr.bf16.mxu0 %v1815_v24 }
 0x74f   :  { %1579 = vmatpush3.bf16.msra.mxu0 %v1578_v32 }
 0x750   :  { %1580 = vmatprep.subr.bf16.mxu0 %v1815_v24 }
 0x753   :  { %1582 = vmatpush3.bf16.msra.mxu0 %v1581_v52 }
 0x754   :  { %1583 = vmatprep.subr.bf16.mxu0 %v1815_v24 }
 0x757   :  { %1585 = vmatpush3.bf16.msra.mxu0 %v1584_v56 }
 0x758   :  { %1586 = vmatprep.subr.bf16.mxu0 %v1815_v24 }
 0x75b   :  { %1588 = vmatpush3.bf16.msra.mxu0 %v1587_v49 }
 0x75c   :  { %1589 = vmatprep.subr.bf16.mxu0 %v1815_v24 }
 0x75f   :  { %1591 = vmatpush3.bf16.msra.mxu0 %v1590_v60 }
 0x815   :  { %v1269_v62 = vpop.f32.mrb[44].mxu0  ;;  %v1310_v0 = vpop.f32.mrb[44].mxu1 }
 0x816   :  { %v1317_v6 = vadd.f32 %v1269_v62, %v2725_v34  ;;  %v1319_v5 = vadd.f32 %v1310_v0, %v2726_v7  ;;  %v1271_v25 = vpop.f32.mrb[45].mxu0  ;;  %v1312_v40 = vpop.f32.mrb[45].mxu1 }
 0x817   :  { %v1318_v43 = vadd.f32 %v1271_v25, %v2727_v2  ;;  %v1320_v14 = vadd.f32 %v1312_v40, %v2728_v61  ;;  %v1273_v46 = vpop.f32.mrb[46].mxu0  ;;  %v1314_v42 = vpop.f32.mrb[46].mxu1 }
 0x818   :  { %v1512_v48 = vmul.f32 -1.442695, %v1317_v6  ;;  %v1274_v59 = vpop.f32.mrb[47].mxu0  ;;  %v1315_v45 = vpop.f32.mrb[47].mxu1 }
 0x819   :  { %v1513_v4 = vmul.f32 -1.442695, %v1318_v43  ;;  %v1514_v3 = vmul.f32 -1.442695, %v1320_v14 }
 0x81a   :  { %1766 = vpow2.f32 %v1512_v48 }
 0x81b   :  { %1768 = vpow2.f32 %v1513_v4 }
 0x81c   :  { %1770 = vpow2.f32 %v1514_v3 }
 0x81d   :  { %1772 = vtanh.f32 %v1319_v5 }
 0x824   :  { %v1767_v51 = vpop.eup %1766 }
 0x825   :  { %v1769_v54 = vpop.eup %1768  ;;  %v1324_v10 = vadd.f32 1.0, %v1767_v51 }
 0x826   :  { %v1330_v11 = vadd.f32 1.0, %v1769_v54  ;;  %v1771_v12 = vpop.eup %1770 }
 0x827   :  { %1774 = vrcp.f32 %v1324_v10  ;;  %v1773_v13 = vpop.eup %1772  ;;  %v1337_v33 = vadd.f32 1.0, %v1771_v12 }
 0x828   :  { %1776 = vrcp.f32 %v1330_v11 }
 0x829   :  { %1778 = vrcp.f32 %v1337_v33 }
 0x831   :  { %v1775_v15 = vpop.eup %1774 }
 0x832   :  { %v1777_v16 = vpop.eup %1776  ;;  %v1341_v17 = vmul.f32 %v1775_v15, %v1773_v13 }
 0x833   :  { %v1340_v18 = vmul.f32 %v1777_v16, %v2613_v20  ;;  %v1779_v19 = vpop.eup %1778 }
 0x835   :  { %v1342_v35 = vadd.f32 %v1341_v17, %v1340_v18 }
 0x837   :  { %1780 = vtanh.f32 %v1342_v35 }
 0x841   :  { %v1781_v36 = vpop.eup %1780 }
 0x842   :  { %v1344_v37 = vmul.f32 %v1781_v36, %v1779_v19 }
 0x844   :  { %1566 = vmatmul.mubr.f32.vlgmr.msra.gmra.mrb[48].mxu0 %v1344_v37 }
 0x917   :  { %v1434_v38 = vpop.f32.mrb[48].mxu0 }
 0x918   :  { %v1435_v22 = vadd.f32 %v1515_v21, %v1434_v38  ;;  %v1567_v39 = vpop.f32.mrb[49].mxu0 }
 0x91a   :  { %1438 = vst [vmem:[%s2683_s8] sm:$0xff] %v1435_v22 }

</bundles_post_ra>
